<compile_context>
chip_gen: v5e
topology: v5e:2x2
jax: 0.10.0
libtpu: 0.0.40
codegen_flags: <defaults>
</compile_context>

<pallas_src>
import functools
import math

import jax
import jax.numpy as jnp
from jax.experimental import pallas as pl
from jax.experimental.pallas import tpu as pltpu


# ----------------------------- config (small) -----------------------------
VOCAB = 64           # logical vocab size (reference semantics)
VOCAB_PAD = 128      # lane-dense padded vocab (multiple of 128 lanes)
N_POS = 16
N_EMBD = 32
N_HEAD = 2
N_LAYER = 2
HEAD_DIM = N_EMBD // N_HEAD
LN_EPS = 1e-5

F32 = jnp.float32
BF16 = jnp.bfloat16


# ------------------------------ kernel helpers ------------------------------
def _gelu_new(x):
    # GPT-2 "gelu_new": 0.5*x*(1+tanh(sqrt(2/pi)*(x + 0.044715*x^3))); f32 math.
    c = math.sqrt(2.0 / math.pi)
    return 0.5 * x * (1.0 + jnp.tanh(c * (x + 0.044715 * x * x * x)))


def _layernorm(x, g, b):
    # x: [M, C] f32, g/b: [1, C] f32; statistics kept in f32.
    mean = jnp.mean(x, axis=-1, keepdims=True)
    xc = x - mean
    var = jnp.mean(xc * xc, axis=-1, keepdims=True)
    return xc * jax.lax.rsqrt(var + LN_EPS) * g + b


# ------------------------------ fused kernel --------------------------------
def gpt2_fused_kernel(ids_ref, pos_ref, wte_ref, wpe_ref,
                      ln1g_ref, ln1b_ref, wqkv_ref, bqkv_ref,
                      wproj_ref, bproj_ref,
                      ln2g_ref, ln2b_ref,
                      wfc_ref, bfc_ref, wmp_ref, bmp_ref,
                      lnfg_ref, lnfb_ref,
                      out_ref, attn_scr, *, batch, seq):
    bt = batch * seq
    vpad, c = wte_ref.shape                      # (128, 32)
    n_pos = wpe_ref.shape[0]
    n_layer = wqkv_ref.shape[0]
    n_head = N_HEAD
    d = c // n_head

    # ---- embeddings: one-hot @ table keeps the gather on the MXU -----------
    # TODO(synk): replace with scalar-prefetch gather at real vocab size.
    ids = ids_ref[...]                                            # [BT, 1] int32
    pos = pos_ref[...]                                            # [BT, 1] int32
    vocab_iota = jax.lax.broadcasted_iota(jnp.int32, (bt, vpad), 1)
    pos_iota = jax.lax.broadcasted_iota(jnp.int32, (bt, n_pos), 1)
    tok_oh = jnp.where(ids == vocab_iota, 1.0, 0.0).astype(BF16)  # [BT, 128]
    pos_oh = jnp.where(pos == pos_iota, 1.0, 0.0).astype(BF16)    # [BT, 16]
    h = (jnp.dot(tok_oh, wte_ref[...], preferred_element_type=F32)
         + jnp.dot(pos_oh, wpe_ref[...], preferred_element_type=F32))  # [BT,C] f32

    # ---- causal mask: built once, reused across all layers / heads ---------
    row = jax.lax.broadcasted_iota(jnp.int32, (seq, seq), 0)
    col = jax.lax.broadcasted_iota(jnp.int32, (seq, seq), 1)
    causal = (col <= row)[None, :, :]                             # [1, T, T]
    neg = jnp.float32(-1e30)

    for l in range(n_layer):
        # ------------------- attention sub-block ---------------------------
        x = _layernorm(h, ln1g_ref[l], ln1b_ref[l])               # [BT, C] f32
        # ONE fused QKV matmul (1/sqrt(d) already folded into Q weight/bias).
        qkv = (jnp.dot(x.astype(BF16), wqkv_ref[l],
                       preferred_element_type=F32) + bqkv_ref[l]) # [BT, 3C] f32
        qkv_bf = qkv.astype(BF16)

        for hh in range(n_head):
            # Per-head views are static lane slices + leading-dim reshapes
            # (no weight copies, no 4-D transposes).
            q = qkv_bf[:, 0 * c + hh * d:0 * c + (hh + 1) * d].reshape(batch, seq, d)
            k = qkv_bf[:, 1 * c + hh * d:1 * c + (hh + 1) * d].reshape(batch, seq, d)
            v = qkv_bf[:, 2 * c + hh * d:2 * c + (hh + 1) * d].reshape(batch, seq, d)
            # scores: batched over B, contract on last dim (no k transpose).
            s = jax.lax.dot_general(q, k, (((2,), (2,)), ((0,), (0,))),
                                    preferred_element_type=F32)   # [B, T, T] f32
            s = jnp.where(causal, s, neg)
            s = s - jnp.max(s, axis=-1, keepdims=True)
            p = jnp.exp(s)
            denom = jnp.sum(p, axis=-1, keepdims=True)
            p = p * pl.reciprocal(denom, approx=True)             # EUP slot
            o = jax.lax.dot_general(p.astype(BF16), v, (((2,), (1,)), ((0,), (0,))),
                                    preferred_element_type=F32)   # [B, T, D] f32
            # Merge heads by writing into the [BT, C] VMEM scratch columns.
            attn_scr[:, hh * d:(hh + 1) * d] = o.reshape(bt, d)

        # ONE fused output projection [BT, C] @ [C, C]; residual stays in VMEM.
        o_all = attn_scr[...].astype(BF16)                        # [BT, C]
        h = h + jnp.dot(o_all, wproj_ref[l],
                        preferred_element_type=F32) + bproj_ref[l]

        # ------------------- MLP sub-block ---------------------------------
        x = _layernorm(h, ln2g_ref[l], ln2b_ref[l])
        y = jnp.dot(x.astype(BF16), wfc_ref[l],
                    preferred_element_type=F32) + bfc_ref[l]      # [BT, 4C] f32
        y = _gelu_new(y)
        y = jnp.dot(y.astype(BF16), wmp_ref[l],
                    preferred_element_type=F32) + bmp_ref[l]      # [BT, C] f32
        h = h + y

    # ---- final LN + tied LM head (contract on C; wte never transposed) -----
    xf = _layernorm(h, lnfg_ref[...], lnfb_ref[...]).astype(BF16)
    logits = jax.lax.dot_general(xf, wte_ref[...], (((1,), (1,)), ((), ())),
                                 preferred_element_type=F32)      # [BT, 128]
    out_ref[...] = logits.astype(out_ref.dtype)                   # lane-dense store


# ------------------------------ parameters ----------------------------------
def init_params(key):
    """GPT-2 style (HF Conv1D) parameter layout, same as the reference model."""
    def normal(k, shape, std=0.02):
        return std * jax.random.normal(k, shape, dtype=jnp.float32)

    keys = jax.random.split(key, 2 + 4 * N_LAYER)
    params = {
        "wte": normal(keys[0], (VOCAB, N_EMBD)),
        "wpe": normal(keys[1], (N_POS, N_EMBD)),
        "lnf_g": jnp.ones((N_EMBD,), jnp.float32),
        "lnf_b": jnp.zeros((N_EMBD,), jnp.float32),
        "blocks": [],
    }
    for l in range(N_LAYER):
        kk = keys[2 + 4 * l: 2 + 4 * (l + 1)]
        blk = {
            "ln1_g": jnp.ones((N_EMBD,), jnp.float32),
            "ln1_b": jnp.zeros((N_EMBD,), jnp.float32),
            "attn_w": normal(kk[0], (N_EMBD, 3 * N_EMBD)),
            "attn_b": jnp.zeros((3 * N_EMBD,), jnp.float32),
            "proj_w": normal(kk[1], (N_EMBD, N_EMBD)),
            "proj_b": jnp.zeros((N_EMBD,), jnp.float32),
            "ln2_g": jnp.ones((N_EMBD,), jnp.float32),
            "ln2_b": jnp.zeros((N_EMBD,), jnp.float32),
            "fc_w": normal(kk[2], (N_EMBD, 4 * N_EMBD)),
            "fc_b": jnp.zeros((4 * N_EMBD,), jnp.float32),
            "mproj_w": normal(kk[3], (4 * N_EMBD, N_EMBD)),
            "mproj_b": jnp.zeros((N_EMBD,), jnp.float32),
        }
        params["blocks"].append(blk)
    return params


def prepare_kernel_params(params):
    """One-time re-layout into the kernel-facing format (outside jit).

    * QKV stays FUSED ([L, C, 3C]); 1/sqrt(head_dim) is folded into the Q third.
    * Output / MLP projections stay fused ([L, C, C], [L, C, 4C], [L, 4C, C]).
    * Matmul weights are stored bf16 (MXU operands); biases & LN params stay f32.
    * wte is zero-padded on the vocab axis to 128 so the tied LM head and the
      logits store are lane-dense.
    """
    C = N_EMBD
    scale = 1.0 / math.sqrt(HEAD_DIM)

    wte_pad = jnp.zeros((VOCAB_PAD, C), jnp.float32).at[:VOCAB].set(params["wte"])

    acc = {k: [] for k in ("ln1_g", "ln1_b", "ln2_g", "ln2_b",
                           "w_qkv", "b_qkv", "w_proj", "b_proj",
                           "w_fc", "b_fc", "w_mp", "b_mp")}
    qkv_scale = jnp.concatenate(
        [jnp.full((C,), scale, jnp.float32), jnp.ones((2 * C,), jnp.float32)])
    for blk in params["blocks"]:
        acc["w_qkv"].append(blk["attn_w"] * qkv_scale[None, :])
        acc["b_qkv"].append((blk["attn_b"] * qkv_scale).reshape(1, 3 * C))
        acc["w_proj"].append(blk["proj_w"])
        acc["b_proj"].append(blk["proj_b"].reshape(1, C))
        acc["w_fc"].append(blk["fc_w"])
        acc["b_fc"].append(blk["fc_b"].reshape(1, 4 * C))
        acc["w_mp"].append(blk["mproj_w"])
        acc["b_mp"].append(blk["mproj_b"].reshape(1, C))
        acc["ln1_g"].append(blk["ln1_g"].reshape(1, C))
        acc["ln1_b"].append(blk["ln1_b"].reshape(1, C))
        acc["ln2_g"].append(blk["ln2_g"].reshape(1, C))
        acc["ln2_b"].append(blk["ln2_b"].reshape(1, C))

    stacked = {k: jnp.stack(v, axis=0) for k, v in acc.items()}
    kp = {}
    for k in ("w_qkv", "w_proj", "w_fc", "w_mp"):          # bf16 MXU operands
        kp[k] = stacked[k].astype(jnp.bfloat16)
    for k in ("b_qkv", "b_proj", "b_fc", "b_mp",
              "ln1_g", "ln1_b", "ln2_g", "ln2_b"):          # f32 VPU math
        kp[k] = stacked[k]
    kp["wte"] = wte_pad.astype(jnp.bfloat16)
    kp["wpe"] = params["wpe"].astype(jnp.bfloat16)
    kp["lnf_g"] = params["lnf_g"].reshape(1, C)
    kp["lnf_b"] = params["lnf_b"].reshape(1, C)
    return kp


# ------------------------------ forward --------------------------------------
def gpt2_forward(kparams, input_ids):
    B, T = input_ids.shape
    BT = B * T
    # Clamp ids so out-of-range tokens cannot silently produce zero embeddings.
    ids = jnp.clip(input_ids.astype(jnp.int32), 0, VOCAB - 1).reshape(BT, 1)
    pos = jnp.broadcast_to(jnp.arange(T, dtype=jnp.int32)[None, :],
                           (B, T)).reshape(BT, 1)

    kernel = functools.partial(gpt2_fused_kernel, batch=B, seq=T)
    logits_pad = pl.pallas_call(
        kernel,
        out_shape=jax.ShapeDtypeStruct((BT, VOCAB_PAD), jnp.float32),
        scratch_shapes=[pltpu.VMEM((BT, N_EMBD), jnp.float32)],
        # No grid: the whole (tiny) forward runs as one invocation with every
        # weight / activation resident in VMEM.
        # TODO(synk): at real scale add a (row-tile, vocab-tile, layer) grid with
        # dimension_semantics=("parallel","parallel","arbitrary") and bumped
        # vmem_limit_bytes.
    )(ids, pos,
      kparams["wte"], kparams["wpe"],
      kparams["ln1_g"], kparams["ln1_b"],
      kparams["w_qkv"], kparams["b_qkv"],
      kparams["w_proj"], kparams["b_proj"],
      kparams["ln2_g"], kparams["ln2_b"],
      kparams["w_fc"], kparams["b_fc"], kparams["w_mp"], kparams["b_mp"],
      kparams["lnf_g"], kparams["lnf_b"])
    # Drop the lane-padding columns to recover the exact [B, T, VOCAB] logits.
    return logits_pad[:, :VOCAB].reshape(B, T, VOCAB)


# ------------------------------ main ------------------------------------------
if __name__ == "__main__":
    key = jax.random.PRNGKey(0)
    pkey, ikey = jax.random.split(key)
    params = init_params(pkey)
    kparams = prepare_kernel_params(params)   # one-time layout prep (outside jit)

    B, T = 2, 8
    input_ids = jax.random.randint(ikey, (B, T), 0, VOCAB, dtype=jnp.int32)

    logits = jax.jit(gpt2_forward)(kparams, input_ids)
    jax.block_until_ready(logits)

    assert logits.shape == (B, T, VOCAB)
    assert logits.dtype == jnp.float32
    assert bool(jnp.all(jnp.isfinite(logits)))
    print("KERNEL_OK")
</pallas_src>

<mosaic_0001>
module attributes {stable_mosaic.version = 11 : i64} {
  func.func @gpt2_fused_kernel(%arg0: memref<16x1xi32, #tpu.memory_space<vmem>>, %arg1: memref<16x1xi32, #tpu.memory_space<vmem>>, %arg2: memref<128x32xbf16, #tpu.memory_space<vmem>>, %arg3: memref<16x32xbf16, #tpu.memory_space<vmem>>, %arg4: memref<2x1x32xf32, #tpu.memory_space<vmem>>, %arg5: memref<2x1x32xf32, #tpu.memory_space<vmem>>, %arg6: memref<2x32x96xbf16, #tpu.memory_space<vmem>>, %arg7: memref<2x1x96xf32, #tpu.memory_space<vmem>>, %arg8: memref<2x32x32xbf16, #tpu.memory_space<vmem>>, %arg9: memref<2x1x32xf32, #tpu.memory_space<vmem>>, %arg10: memref<2x1x32xf32, #tpu.memory_space<vmem>>, %arg11: memref<2x1x32xf32, #tpu.memory_space<vmem>>, %arg12: memref<2x32x128xbf16, #tpu.memory_space<vmem>>, %arg13: memref<2x1x128xf32, #tpu.memory_space<vmem>>, %arg14: memref<2x128x32xbf16, #tpu.memory_space<vmem>>, %arg15: memref<2x1x32xf32, #tpu.memory_space<vmem>>, %arg16: memref<1x32xf32, #tpu.memory_space<vmem>>, %arg17: memref<1x32xf32, #tpu.memory_space<vmem>>, %arg18: memref<16x128xf32, #tpu.memory_space<vmem>>, %arg19: memref<16x32xf32, #tpu.memory_space<vmem>>) attributes {dimension_semantics = [], scalar_prefetch = 0 : i64, scratch_operands = 1 : i64, tpu.core_type = #tpu.core_type<tc>} {
    %c0 = arith.constant 0 : index
    %c0_0 = arith.constant 0 : index
    %0 = vector.load %arg0[%c0, %c0_0] : memref<16x1xi32, #tpu.memory_space<vmem>>, vector<16x1xi32>
    %c0_1 = arith.constant 0 : index
    %c0_2 = arith.constant 0 : index
    %1 = vector.load %arg1[%c0_1, %c0_2] : memref<16x1xi32, #tpu.memory_space<vmem>>, vector<16x1xi32>
    %2 = tpu.iota {dimensions = array<i32: 1>} : vector<16x128xi32>
    %3 = tpu.iota {dimensions = array<i32: 1>} : vector<16x16xi32>
    %4 = vector.broadcast %0 : vector<16x1xi32> to vector<16x128xi32>
    %5 = arith.cmpi eq, %4, %2 : vector<16x128xi32>
    %cst = arith.constant 1.000000e+00 : f32
    %cst_3 = arith.constant 0.000000e+00 : f32
    %6 = vector.broadcast %cst : f32 to vector<16x128xf32>
    %7 = vector.broadcast %cst_3 : f32 to vector<16x128xf32>
    %8 = arith.select %5, %6, %7 : vector<16x128xi1>, vector<16x128xf32>
    %9 = arith.truncf %8 : vector<16x128xf32> to vector<16x128xbf16>
    %10 = vector.broadcast %1 : vector<16x1xi32> to vector<16x16xi32>
    %11 = arith.cmpi eq, %10, %3 : vector<16x16xi32>
    %cst_4 = arith.constant 1.000000e+00 : f32
    %cst_5 = arith.constant 0.000000e+00 : f32
    %12 = vector.broadcast %cst_4 : f32 to vector<16x16xf32>
    %13 = vector.broadcast %cst_5 : f32 to vector<16x16xf32>
    %14 = arith.select %11, %12, %13 : vector<16x16xi1>, vector<16x16xf32>
    %15 = arith.truncf %14 : vector<16x16xf32> to vector<16x16xbf16>
    %c0_6 = arith.constant 0 : index
    %c0_7 = arith.constant 0 : index
    %16 = vector.load %arg2[%c0_6, %c0_7] : memref<128x32xbf16, #tpu.memory_space<vmem>>, vector<128x32xbf16>
    %cst_8 = arith.constant dense<0.000000e+00> : vector<16x32xf32>
    %17 = tpu.matmul %9, %16, %cst_8 {dimension_numbers = #tpu.dot_dimension_numbers<[1], [0], [0], [1], [0, 0, 1, 1], [], []>} : vector<16x128xbf16>, vector<128x32xbf16>, vector<16x32xf32> -> vector<16x32xf32>
    %c0_9 = arith.constant 0 : index
    %c0_10 = arith.constant 0 : index
    %18 = vector.load %arg3[%c0_9, %c0_10] : memref<16x32xbf16, #tpu.memory_space<vmem>>, vector<16x32xbf16>
    %cst_11 = arith.constant dense<0.000000e+00> : vector<16x32xf32>
    %19 = tpu.matmul %15, %18, %cst_11 {dimension_numbers = #tpu.dot_dimension_numbers<[1], [0], [0], [1], [0, 0, 1, 1], [], []>} : vector<16x16xbf16>, vector<16x32xbf16>, vector<16x32xf32> -> vector<16x32xf32>
    %20 = arith.addf %17, %19 : vector<16x32xf32>
    %21 = tpu.iota {dimensions = array<i32: 0>} : vector<8x8xi32>
    %22 = tpu.iota {dimensions = array<i32: 1>} : vector<8x8xi32>
    %23 = arith.cmpi sle, %22, %21 : vector<8x8xi32>
    %24 = vector.shape_cast %23 : vector<8x8xi1> to vector<1x8x8xi1>
    %c0_12 = arith.constant 0 : index
    %c0_13 = arith.constant 0 : index
    %c0_14 = arith.constant 0 : index
    %25 = vector.load %arg4[%c0_12, %c0_13, %c0_14] : memref<2x1x32xf32, #tpu.memory_space<vmem>>, vector<1x1x32xf32>
    %26 = vector.shape_cast %25 : vector<1x1x32xf32> to vector<1x32xf32>
    %c0_15 = arith.constant 0 : index
    %c0_16 = arith.constant 0 : index
    %c0_17 = arith.constant 0 : index
    %27 = vector.load %arg5[%c0_15, %c0_16, %c0_17] : memref<2x1x32xf32, #tpu.memory_space<vmem>>, vector<1x1x32xf32>
    %28 = vector.shape_cast %27 : vector<1x1x32xf32> to vector<1x32xf32>
    %cst_18 = arith.constant dense<0.000000e+00> : vector<16xf32>
    %29 = vector.multi_reduction <add>, %20, %cst_18 [1] : vector<16x32xf32> to vector<16xf32>
    %30 = vector.shape_cast %29 : vector<16xf32> to vector<16x1xf32>
    %cst_19 = arith.constant 3.200000e+01 : f32
    %31 = vector.broadcast %cst_19 : f32 to vector<16x1xf32>
    %32 = arith.divf %30, %31 : vector<16x1xf32>
    %33 = vector.broadcast %32 : vector<16x1xf32> to vector<16x32xf32>
    %34 = arith.subf %20, %33 : vector<16x32xf32>
    %35 = arith.mulf %34, %34 : vector<16x32xf32>
    %cst_20 = arith.constant dense<0.000000e+00> : vector<16xf32>
    %36 = vector.multi_reduction <add>, %35, %cst_20 [1] : vector<16x32xf32> to vector<16xf32>
    %37 = vector.shape_cast %36 : vector<16xf32> to vector<16x1xf32>
    %cst_21 = arith.constant 3.200000e+01 : f32
    %38 = vector.broadcast %cst_21 : f32 to vector<16x1xf32>
    %39 = arith.divf %37, %38 : vector<16x1xf32>
    %cst_22 = arith.constant 9.99999974E-6 : f32
    %40 = vector.broadcast %cst_22 : f32 to vector<16x1xf32>
    %41 = arith.addf %39, %40 : vector<16x1xf32>
    %42 = math.rsqrt %41 : vector<16x1xf32>
    %43 = vector.broadcast %42 : vector<16x1xf32> to vector<16x32xf32>
    %44 = arith.mulf %34, %43 : vector<16x32xf32>
    %45 = vector.broadcast %26 : vector<1x32xf32> to vector<16x32xf32>
    %46 = arith.mulf %44, %45 : vector<16x32xf32>
    %47 = vector.broadcast %28 : vector<1x32xf32> to vector<16x32xf32>
    %48 = arith.addf %46, %47 : vector<16x32xf32>
    %49 = arith.truncf %48 : vector<16x32xf32> to vector<16x32xbf16>
    %c0_23 = arith.constant 0 : index
    %c0_24 = arith.constant 0 : index
    %c0_25 = arith.constant 0 : index
    %50 = vector.load %arg6[%c0_23, %c0_24, %c0_25] : memref<2x32x96xbf16, #tpu.memory_space<vmem>>, vector<1x32x96xbf16>
    %51 = vector.shape_cast %50 : vector<1x32x96xbf16> to vector<32x96xbf16>
    %cst_26 = arith.constant dense<0.000000e+00> : vector<16x96xf32>
    %52 = tpu.matmul %49, %51, %cst_26 {dimension_numbers = #tpu.dot_dimension_numbers<[1], [0], [0], [1], [0, 0, 1, 1], [], []>} : vector<16x32xbf16>, vector<32x96xbf16>, vector<16x96xf32> -> vector<16x96xf32>
    %c0_27 = arith.constant 0 : index
    %c0_28 = arith.constant 0 : index
    %c0_29 = arith.constant 0 : index
    %53 = vector.load %arg7[%c0_27, %c0_28, %c0_29] : memref<2x1x96xf32, #tpu.memory_space<vmem>>, vector<1x1x96xf32>
    %54 = vector.shape_cast %53 : vector<1x1x96xf32> to vector<1x96xf32>
    %55 = vector.broadcast %54 : vector<1x96xf32> to vector<16x96xf32>
    %56 = arith.addf %52, %55 : vector<16x96xf32>
    %57 = arith.truncf %56 : vector<16x96xf32> to vector<16x96xbf16>
    %58 = vector.extract_strided_slice %57 {offsets = [0, 0], sizes = [16, 16], strides = [1, 1]} : vector<16x96xbf16> to vector<16x16xbf16>
    %59 = vector.shape_cast %58 : vector<16x16xbf16> to vector<2x8x16xbf16>
    %60 = vector.extract_strided_slice %57 {offsets = [0, 32], sizes = [16, 16], strides = [1, 1]} : vector<16x96xbf16> to vector<16x16xbf16>
    %61 = vector.shape_cast %60 : vector<16x16xbf16> to vector<2x8x16xbf16>
    %62 = vector.extract_strided_slice %57 {offsets = [0, 64], sizes = [16, 16], strides = [1, 1]} : vector<16x96xbf16> to vector<16x16xbf16>
    %63 = vector.shape_cast %62 : vector<16x16xbf16> to vector<2x8x16xbf16>
    %cst_30 = arith.constant dense<0.000000e+00> : vector<2x8x8xf32>
    %64 = tpu.matmul %59, %61, %cst_30 {dimension_numbers = #tpu.dot_dimension_numbers<[2], [2], [1], [1], [0, 0, 0, 1, 1, 1], [0], [0]>} : vector<2x8x16xbf16>, vector<2x8x16xbf16>, vector<2x8x8xf32> -> vector<2x8x8xf32>
    %cst_31 = arith.constant -1.000000e+30 : f32
    %65 = vector.shape_cast %24 : vector<1x8x8xi1> to vector<1x8x8xi1>
    %66 = vector.broadcast %65 : vector<1x8x8xi1> to vector<2x8x8xi1>
    %67 = vector.broadcast %cst_31 : f32 to vector<2x8x8xf32>
    %68 = arith.select %66, %64, %67 : vector<2x8x8xi1>, vector<2x8x8xf32>
    %cst_32 = arith.constant dense<0xFF800000> : vector<2x8xf32>
    %69 = vector.multi_reduction <maximumf>, %68, %cst_32 [2] : vector<2x8x8xf32> to vector<2x8xf32>
    %70 = vector.shape_cast %69 : vector<2x8xf32> to vector<2x8x1xf32>
    %71 = vector.broadcast %70 : vector<2x8x1xf32> to vector<2x8x8xf32>
    %72 = arith.subf %68, %71 : vector<2x8x8xf32>
    %73 = math.exp %72 : vector<2x8x8xf32>
    %cst_33 = arith.constant dense<0.000000e+00> : vector<2x8xf32>
    %74 = vector.multi_reduction <add>, %73, %cst_33 [2] : vector<2x8x8xf32> to vector<2x8xf32>
    %75 = vector.shape_cast %74 : vector<2x8xf32> to vector<2x8x1xf32>
    %76 = tpu.reciprocal %75 {approx = true} : vector<2x8x1xf32> -> vector<2x8x1xf32>
    %77 = vector.broadcast %76 : vector<2x8x1xf32> to vector<2x8x8xf32>
    %78 = arith.mulf %73, %77 : vector<2x8x8xf32>
    %79 = arith.truncf %78 : vector<2x8x8xf32> to vector<2x8x8xbf16>
    %cst_34 = arith.constant dense<0.000000e+00> : vector<2x8x16xf32>
    %80 = tpu.matmul %79, %63, %cst_34 {dimension_numbers = #tpu.dot_dimension_numbers<[2], [1], [1], [2], [0, 0, 0, 1, 1, 2], [0], [0]>} : vector<2x8x8xbf16>, vector<2x8x16xbf16>, vector<2x8x16xf32> -> vector<2x8x16xf32>
    %81 = vector.shape_cast %80 : vector<2x8x16xf32> to vector<16x16xf32>
    %c0_35 = arith.constant 0 : index
    %c0_36 = arith.constant 0 : index
    %82 = vector.load %arg19[%c0_35, %c0_36] : memref<16x32xf32, #tpu.memory_space<vmem>>, vector<16x16xf32>
    tpu.vector_store %arg19[%c0_35, %c0_36], %81 {strides = array<i32>} : memref<16x32xf32, #tpu.memory_space<vmem>>, vector<16x16xf32>,
    %83 = vector.extract_strided_slice %57 {offsets = [0, 16], sizes = [16, 16], strides = [1, 1]} : vector<16x96xbf16> to vector<16x16xbf16>
    %84 = vector.shape_cast %83 : vector<16x16xbf16> to vector<2x8x16xbf16>
    %85 = vector.extract_strided_slice %57 {offsets = [0, 48], sizes = [16, 16], strides = [1, 1]} : vector<16x96xbf16> to vector<16x16xbf16>
    %86 = vector.shape_cast %85 : vector<16x16xbf16> to vector<2x8x16xbf16>
    %87 = vector.extract_strided_slice %57 {offsets = [0, 80], sizes = [16, 16], strides = [1, 1]} : vector<16x96xbf16> to vector<16x16xbf16>
    %88 = vector.shape_cast %87 : vector<16x16xbf16> to vector<2x8x16xbf16>
    %cst_37 = arith.constant dense<0.000000e+00> : vector<2x8x8xf32>
    %89 = tpu.matmul %84, %86, %cst_37 {dimension_numbers = #tpu.dot_dimension_numbers<[2], [2], [1], [1], [0, 0, 0, 1, 1, 1], [0], [0]>} : vector<2x8x16xbf16>, vector<2x8x16xbf16>, vector<2x8x8xf32> -> vector<2x8x8xf32>
    %cst_38 = arith.constant -1.000000e+30 : f32
    %90 = vector.shape_cast %24 : vector<1x8x8xi1> to vector<1x8x8xi1>
    %91 = vector.broadcast %90 : vector<1x8x8xi1> to vector<2x8x8xi1>
    %92 = vector.broadcast %cst_38 : f32 to vector<2x8x8xf32>
    %93 = arith.select %91, %89, %92 : vector<2x8x8xi1>, vector<2x8x8xf32>
    %cst_39 = arith.constant dense<0xFF800000> : vector<2x8xf32>
    %94 = vector.multi_reduction <maximumf>, %93, %cst_39 [2] : vector<2x8x8xf32> to vector<2x8xf32>
    %95 = vector.shape_cast %94 : vector<2x8xf32> to vector<2x8x1xf32>
    %96 = vector.broadcast %95 : vector<2x8x1xf32> to vector<2x8x8xf32>
    %97 = arith.subf %93, %96 : vector<2x8x8xf32>
    %98 = math.exp %97 : vector<2x8x8xf32>
    %cst_40 = arith.constant dense<0.000000e+00> : vector<2x8xf32>
    %99 = vector.multi_reduction <add>, %98, %cst_40 [2] : vector<2x8x8xf32> to vector<2x8xf32>
    %100 = vector.shape_cast %99 : vector<2x8xf32> to vector<2x8x1xf32>
    %101 = tpu.reciprocal %100 {approx = true} : vector<2x8x1xf32> -> vector<2x8x1xf32>
    %102 = vector.broadcast %101 : vector<2x8x1xf32> to vector<2x8x8xf32>
    %103 = arith.mulf %98, %102 : vector<2x8x8xf32>
    %104 = arith.truncf %103 : vector<2x8x8xf32> to vector<2x8x8xbf16>
    %cst_41 = arith.constant dense<0.000000e+00> : vector<2x8x16xf32>
    %105 = tpu.matmul %104, %88, %cst_41 {dimension_numbers = #tpu.dot_dimension_numbers<[2], [1], [1], [2], [0, 0, 0, 1, 1, 2], [0], [0]>} : vector<2x8x8xbf16>, vector<2x8x16xbf16>, vector<2x8x16xf32> -> vector<2x8x16xf32>
    %106 = vector.shape_cast %105 : vector<2x8x16xf32> to vector<16x16xf32>
    %c0_42 = arith.constant 0 : index
    %c16 = arith.constant 16 : index
    %107 = vector.load %arg19[%c0_42, %c16] : memref<16x32xf32, #tpu.memory_space<vmem>>, vector<16x16xf32>
    tpu.vector_store %arg19[%c0_42, %c16], %106 {strides = array<i32>} : memref<16x32xf32, #tpu.memory_space<vmem>>, vector<16x16xf32>,
    %c0_43 = arith.constant 0 : index
    %c0_44 = arith.constant 0 : index
    %108 = vector.load %arg19[%c0_43, %c0_44] : memref<16x32xf32, #tpu.memory_space<vmem>>, vector<16x32xf32>
    %109 = arith.truncf %108 : vector<16x32xf32> to vector<16x32xbf16>
    %c0_45 = arith.constant 0 : index
    %c0_46 = arith.constant 0 : index
    %c0_47 = arith.constant 0 : index
    %110 = vector.load %arg8[%c0_45, %c0_46, %c0_47] : memref<2x32x32xbf16, #tpu.memory_space<vmem>>, vector<1x32x32xbf16>
    %111 = vector.shape_cast %110 : vector<1x32x32xbf16> to vector<32x32xbf16>
    %cst_48 = arith.constant dense<0.000000e+00> : vector<16x32xf32>
    %112 = tpu.matmul %109, %111, %cst_48 {dimension_numbers = #tpu.dot_dimension_numbers<[1], [0], [0], [1], [0, 0, 1, 1], [], []>} : vector<16x32xbf16>, vector<32x32xbf16>, vector<16x32xf32> -> vector<16x32xf32>
    %113 = arith.addf %20, %112 : vector<16x32xf32>
    %c0_49 = arith.constant 0 : index
    %c0_50 = arith.constant 0 : index
    %c0_51 = arith.constant 0 : index
    %114 = vector.load %arg9[%c0_49, %c0_50, %c0_51] : memref<2x1x32xf32, #tpu.memory_space<vmem>>, vector<1x1x32xf32>
    %115 = vector.shape_cast %114 : vector<1x1x32xf32> to vector<1x32xf32>
    %116 = vector.broadcast %115 : vector<1x32xf32> to vector<16x32xf32>
    %117 = arith.addf %113, %116 : vector<16x32xf32>
    %c0_52 = arith.constant 0 : index
    %c0_53 = arith.constant 0 : index
    %c0_54 = arith.constant 0 : index
    %118 = vector.load %arg10[%c0_52, %c0_53, %c0_54] : memref<2x1x32xf32, #tpu.memory_space<vmem>>, vector<1x1x32xf32>
    %119 = vector.shape_cast %118 : vector<1x1x32xf32> to vector<1x32xf32>
    %c0_55 = arith.constant 0 : index
    %c0_56 = arith.constant 0 : index
    %c0_57 = arith.constant 0 : index
    %120 = vector.load %arg11[%c0_55, %c0_56, %c0_57] : memref<2x1x32xf32, #tpu.memory_space<vmem>>, vector<1x1x32xf32>
    %121 = vector.shape_cast %120 : vector<1x1x32xf32> to vector<1x32xf32>
    %cst_58 = arith.constant dense<0.000000e+00> : vector<16xf32>
    %122 = vector.multi_reduction <add>, %117, %cst_58 [1] : vector<16x32xf32> to vector<16xf32>
    %123 = vector.shape_cast %122 : vector<16xf32> to vector<16x1xf32>
    %cst_59 = arith.constant 3.200000e+01 : f32
    %124 = vector.broadcast %cst_59 : f32 to vector<16x1xf32>
    %125 = arith.divf %123, %124 : vector<16x1xf32>
    %126 = vector.broadcast %125 : vector<16x1xf32> to vector<16x32xf32>
    %127 = arith.subf %117, %126 : vector<16x32xf32>
    %128 = arith.mulf %127, %127 : vector<16x32xf32>
    %cst_60 = arith.constant dense<0.000000e+00> : vector<16xf32>
    %129 = vector.multi_reduction <add>, %128, %cst_60 [1] : vector<16x32xf32> to vector<16xf32>
    %130 = vector.shape_cast %129 : vector<16xf32> to vector<16x1xf32>
    %cst_61 = arith.constant 3.200000e+01 : f32
    %131 = vector.broadcast %cst_61 : f32 to vector<16x1xf32>
    %132 = arith.divf %130, %131 : vector<16x1xf32>
    %cst_62 = arith.constant 9.99999974E-6 : f32
    %133 = vector.broadcast %cst_62 : f32 to vector<16x1xf32>
    %134 = arith.addf %132, %133 : vector<16x1xf32>
    %135 = math.rsqrt %134 : vector<16x1xf32>
    %136 = vector.broadcast %135 : vector<16x1xf32> to vector<16x32xf32>
    %137 = arith.mulf %127, %136 : vector<16x32xf32>
    %138 = vector.broadcast %119 : vector<1x32xf32> to vector<16x32xf32>
    %139 = arith.mulf %137, %138 : vector<16x32xf32>
    %140 = vector.broadcast %121 : vector<1x32xf32> to vector<16x32xf32>
    %141 = arith.addf %139, %140 : vector<16x32xf32>
    %142 = arith.truncf %141 : vector<16x32xf32> to vector<16x32xbf16>
    %c0_63 = arith.constant 0 : index
    %c0_64 = arith.constant 0 : index
    %c0_65 = arith.constant 0 : index
    %143 = vector.load %arg12[%c0_63, %c0_64, %c0_65] : memref<2x32x128xbf16, #tpu.memory_space<vmem>>, vector<1x32x128xbf16>
    %144 = vector.shape_cast %143 : vector<1x32x128xbf16> to vector<32x128xbf16>
    %cst_66 = arith.constant dense<0.000000e+00> : vector<16x128xf32>
    %145 = tpu.matmul %142, %144, %cst_66 {dimension_numbers = #tpu.dot_dimension_numbers<[1], [0], [0], [1], [0, 0, 1, 1], [], []>} : vector<16x32xbf16>, vector<32x128xbf16>, vector<16x128xf32> -> vector<16x128xf32>
    %c0_67 = arith.constant 0 : index
    %c0_68 = arith.constant 0 : index
    %c0_69 = arith.constant 0 : index
    %146 = vector.load %arg13[%c0_67, %c0_68, %c0_69] : memref<2x1x128xf32, #tpu.memory_space<vmem>>, vector<1x1x128xf32>
    %147 = vector.shape_cast %146 : vector<1x1x128xf32> to vector<1x128xf32>
    %148 = vector.broadcast %147 : vector<1x128xf32> to vector<16x128xf32>
    %149 = arith.addf %145, %148 : vector<16x128xf32>
    %cst_70 = arith.constant 5.000000e-01 : f32
    %150 = vector.broadcast %cst_70 : f32 to vector<16x128xf32>
    %151 = arith.mulf %150, %149 : vector<16x128xf32>
    %cst_71 = arith.constant 4.471500e-02 : f32
    %152 = vector.broadcast %cst_71 : f32 to vector<16x128xf32>
    %153 = arith.mulf %152, %149 : vector<16x128xf32>
    %154 = arith.mulf %153, %149 : vector<16x128xf32>
    %155 = arith.mulf %154, %149 : vector<16x128xf32>
    %156 = arith.addf %149, %155 : vector<16x128xf32>
    %cst_72 = arith.constant 0.797884583 : f32
    %157 = vector.broadcast %cst_72 : f32 to vector<16x128xf32>
    %158 = arith.mulf %157, %156 : vector<16x128xf32>
    %159 = math.tanh %158 : vector<16x128xf32>
    %cst_73 = arith.constant 1.000000e+00 : f32
    %160 = vector.broadcast %cst_73 : f32 to vector<16x128xf32>
    %161 = arith.addf %160, %159 : vector<16x128xf32>
    %162 = arith.mulf %151, %161 : vector<16x128xf32>
    %163 = arith.truncf %162 : vector<16x128xf32> to vector<16x128xbf16>
    %c0_74 = arith.constant 0 : index
    %c0_75 = arith.constant 0 : index
    %c0_76 = arith.constant 0 : index
    %164 = vector.load %arg14[%c0_74, %c0_75, %c0_76] : memref<2x128x32xbf16, #tpu.memory_space<vmem>>, vector<1x128x32xbf16>
    %165 = vector.shape_cast %164 : vector<1x128x32xbf16> to vector<128x32xbf16>
    %cst_77 = arith.constant dense<0.000000e+00> : vector<16x32xf32>
    %166 = tpu.matmul %163, %165, %cst_77 {dimension_numbers = #tpu.dot_dimension_numbers<[1], [0], [0], [1], [0, 0, 1, 1], [], []>} : vector<16x128xbf16>, vector<128x32xbf16>, vector<16x32xf32> -> vector<16x32xf32>
    %c0_78 = arith.constant 0 : index
    %c0_79 = arith.constant 0 : index
    %c0_80 = arith.constant 0 : index
    %167 = vector.load %arg15[%c0_78, %c0_79, %c0_80] : memref<2x1x32xf32, #tpu.memory_space<vmem>>, vector<1x1x32xf32>
    %168 = vector.shape_cast %167 : vector<1x1x32xf32> to vector<1x32xf32>
    %169 = vector.broadcast %168 : vector<1x32xf32> to vector<16x32xf32>
    %170 = arith.addf %166, %169 : vector<16x32xf32>
    %171 = arith.addf %117, %170 : vector<16x32xf32>
    %c1 = arith.constant 1 : index
    %c0_81 = arith.constant 0 : index
    %c0_82 = arith.constant 0 : index
    %172 = vector.load %arg4[%c1, %c0_81, %c0_82] : memref<2x1x32xf32, #tpu.memory_space<vmem>>, vector<1x1x32xf32>
    %173 = vector.shape_cast %172 : vector<1x1x32xf32> to vector<1x32xf32>
    %c1_83 = arith.constant 1 : index
    %c0_84 = arith.constant 0 : index
    %c0_85 = arith.constant 0 : index
    %174 = vector.load %arg5[%c1_83, %c0_84, %c0_85] : memref<2x1x32xf32, #tpu.memory_space<vmem>>, vector<1x1x32xf32>
    %175 = vector.shape_cast %174 : vector<1x1x32xf32> to vector<1x32xf32>
    %cst_86 = arith.constant dense<0.000000e+00> : vector<16xf32>
    %176 = vector.multi_reduction <add>, %171, %cst_86 [1] : vector<16x32xf32> to vector<16xf32>
    %177 = vector.shape_cast %176 : vector<16xf32> to vector<16x1xf32>
    %cst_87 = arith.constant 3.200000e+01 : f32
    %178 = vector.broadcast %cst_87 : f32 to vector<16x1xf32>
    %179 = arith.divf %177, %178 : vector<16x1xf32>
    %180 = vector.broadcast %179 : vector<16x1xf32> to vector<16x32xf32>
    %181 = arith.subf %171, %180 : vector<16x32xf32>
    %182 = arith.mulf %181, %181 : vector<16x32xf32>
    %cst_88 = arith.constant dense<0.000000e+00> : vector<16xf32>
    %183 = vector.multi_reduction <add>, %182, %cst_88 [1] : vector<16x32xf32> to vector<16xf32>
    %184 = vector.shape_cast %183 : vector<16xf32> to vector<16x1xf32>
    %cst_89 = arith.constant 3.200000e+01 : f32
    %185 = vector.broadcast %cst_89 : f32 to vector<16x1xf32>
    %186 = arith.divf %184, %185 : vector<16x1xf32>
    %cst_90 = arith.constant 9.99999974E-6 : f32
    %187 = vector.broadcast %cst_90 : f32 to vector<16x1xf32>
    %188 = arith.addf %186, %187 : vector<16x1xf32>
    %189 = math.rsqrt %188 : vector<16x1xf32>
    %190 = vector.broadcast %189 : vector<16x1xf32> to vector<16x32xf32>
    %191 = arith.mulf %181, %190 : vector<16x32xf32>
    %192 = vector.broadcast %173 : vector<1x32xf32> to vector<16x32xf32>
    %193 = arith.mulf %191, %192 : vector<16x32xf32>
    %194 = vector.broadcast %175 : vector<1x32xf32> to vector<16x32xf32>
    %195 = arith.addf %193, %194 : vector<16x32xf32>
    %196 = arith.truncf %195 : vector<16x32xf32> to vector<16x32xbf16>
    %c1_91 = arith.constant 1 : index
    %c0_92 = arith.constant 0 : index
    %c0_93 = arith.constant 0 : index
    %197 = vector.load %arg6[%c1_91, %c0_92, %c0_93] : memref<2x32x96xbf16, #tpu.memory_space<vmem>>, vector<1x32x96xbf16>
    %198 = vector.shape_cast %197 : vector<1x32x96xbf16> to vector<32x96xbf16>
    %cst_94 = arith.constant dense<0.000000e+00> : vector<16x96xf32>
    %199 = tpu.matmul %196, %198, %cst_94 {dimension_numbers = #tpu.dot_dimension_numbers<[1], [0], [0], [1], [0, 0, 1, 1], [], []>} : vector<16x32xbf16>, vector<32x96xbf16>, vector<16x96xf32> -> vector<16x96xf32>
    %c1_95 = arith.constant 1 : index
    %c0_96 = arith.constant 0 : index
    %c0_97 = arith.constant 0 : index
    %200 = vector.load %arg7[%c1_95, %c0_96, %c0_97] : memref<2x1x96xf32, #tpu.memory_space<vmem>>, vector<1x1x96xf32>
    %201 = vector.shape_cast %200 : vector<1x1x96xf32> to vector<1x96xf32>
    %202 = vector.broadcast %201 : vector<1x96xf32> to vector<16x96xf32>
    %203 = arith.addf %199, %202 : vector<16x96xf32>
    %204 = arith.truncf %203 : vector<16x96xf32> to vector<16x96xbf16>
    %205 = vector.extract_strided_slice %204 {offsets = [0, 0], sizes = [16, 16], strides = [1, 1]} : vector<16x96xbf16> to vector<16x16xbf16>
    %206 = vector.shape_cast %205 : vector<16x16xbf16> to vector<2x8x16xbf16>
    %207 = vector.extract_strided_slice %204 {offsets = [0, 32], sizes = [16, 16], strides = [1, 1]} : vector<16x96xbf16> to vector<16x16xbf16>
    %208 = vector.shape_cast %207 : vector<16x16xbf16> to vector<2x8x16xbf16>
    %209 = vector.extract_strided_slice %204 {offsets = [0, 64], sizes = [16, 16], strides = [1, 1]} : vector<16x96xbf16> to vector<16x16xbf16>
    %210 = vector.shape_cast %209 : vector<16x16xbf16> to vector<2x8x16xbf16>
    %cst_98 = arith.constant dense<0.000000e+00> : vector<2x8x8xf32>
    %211 = tpu.matmul %206, %208, %cst_98 {dimension_numbers = #tpu.dot_dimension_numbers<[2], [2], [1], [1], [0, 0, 0, 1, 1, 1], [0], [0]>} : vector<2x8x16xbf16>, vector<2x8x16xbf16>, vector<2x8x8xf32> -> vector<2x8x8xf32>
    %cst_99 = arith.constant -1.000000e+30 : f32
    %212 = vector.shape_cast %24 : vector<1x8x8xi1> to vector<1x8x8xi1>
    %213 = vector.broadcast %212 : vector<1x8x8xi1> to vector<2x8x8xi1>
    %214 = vector.broadcast %cst_99 : f32 to vector<2x8x8xf32>
    %215 = arith.select %213, %211, %214 : vector<2x8x8xi1>, vector<2x8x8xf32>
    %cst_100 = arith.constant dense<0xFF800000> : vector<2x8xf32>
    %216 = vector.multi_reduction <maximumf>, %215, %cst_100 [2] : vector<2x8x8xf32> to vector<2x8xf32>
    %217 = vector.shape_cast %216 : vector<2x8xf32> to vector<2x8x1xf32>
    %218 = vector.broadcast %217 : vector<2x8x1xf32> to vector<2x8x8xf32>
    %219 = arith.subf %215, %218 : vector<2x8x8xf32>
    %220 = math.exp %219 : vector<2x8x8xf32>
    %cst_101 = arith.constant dense<0.000000e+00> : vector<2x8xf32>
    %221 = vector.multi_reduction <add>, %220, %cst_101 [2] : vector<2x8x8xf32> to vector<2x8xf32>
    %222 = vector.shape_cast %221 : vector<2x8xf32> to vector<2x8x1xf32>
    %223 = tpu.reciprocal %222 {approx = true} : vector<2x8x1xf32> -> vector<2x8x1xf32>
    %224 = vector.broadcast %223 : vector<2x8x1xf32> to vector<2x8x8xf32>
    %225 = arith.mulf %220, %224 : vector<2x8x8xf32>
    %226 = arith.truncf %225 : vector<2x8x8xf32> to vector<2x8x8xbf16>
    %cst_102 = arith.constant dense<0.000000e+00> : vector<2x8x16xf32>
    %227 = tpu.matmul %226, %210, %cst_102 {dimension_numbers = #tpu.dot_dimension_numbers<[2], [1], [1], [2], [0, 0, 0, 1, 1, 2], [0], [0]>} : vector<2x8x8xbf16>, vector<2x8x16xbf16>, vector<2x8x16xf32> -> vector<2x8x16xf32>
    %228 = vector.shape_cast %227 : vector<2x8x16xf32> to vector<16x16xf32>
    %c0_103 = arith.constant 0 : index
    %c0_104 = arith.constant 0 : index
    %229 = vector.load %arg19[%c0_103, %c0_104] : memref<16x32xf32, #tpu.memory_space<vmem>>, vector<16x16xf32>
    tpu.vector_store %arg19[%c0_103, %c0_104], %228 {strides = array<i32>} : memref<16x32xf32, #tpu.memory_space<vmem>>, vector<16x16xf32>,
    %230 = vector.extract_strided_slice %204 {offsets = [0, 16], sizes = [16, 16], strides = [1, 1]} : vector<16x96xbf16> to vector<16x16xbf16>
    %231 = vector.shape_cast %230 : vector<16x16xbf16> to vector<2x8x16xbf16>
    %232 = vector.extract_strided_slice %204 {offsets = [0, 48], sizes = [16, 16], strides = [1, 1]} : vector<16x96xbf16> to vector<16x16xbf16>
    %233 = vector.shape_cast %232 : vector<16x16xbf16> to vector<2x8x16xbf16>
    %234 = vector.extract_strided_slice %204 {offsets = [0, 80], sizes = [16, 16], strides = [1, 1]} : vector<16x96xbf16> to vector<16x16xbf16>
    %235 = vector.shape_cast %234 : vector<16x16xbf16> to vector<2x8x16xbf16>
    %cst_105 = arith.constant dense<0.000000e+00> : vector<2x8x8xf32>
    %236 = tpu.matmul %231, %233, %cst_105 {dimension_numbers = #tpu.dot_dimension_numbers<[2], [2], [1], [1], [0, 0, 0, 1, 1, 1], [0], [0]>} : vector<2x8x16xbf16>, vector<2x8x16xbf16>, vector<2x8x8xf32> -> vector<2x8x8xf32>
    %cst_106 = arith.constant -1.000000e+30 : f32
    %237 = vector.shape_cast %24 : vector<1x8x8xi1> to vector<1x8x8xi1>
    %238 = vector.broadcast %237 : vector<1x8x8xi1> to vector<2x8x8xi1>
    %239 = vector.broadcast %cst_106 : f32 to vector<2x8x8xf32>
    %240 = arith.select %238, %236, %239 : vector<2x8x8xi1>, vector<2x8x8xf32>
    %cst_107 = arith.constant dense<0xFF800000> : vector<2x8xf32>
    %241 = vector.multi_reduction <maximumf>, %240, %cst_107 [2] : vector<2x8x8xf32> to vector<2x8xf32>
    %242 = vector.shape_cast %241 : vector<2x8xf32> to vector<2x8x1xf32>
    %243 = vector.broadcast %242 : vector<2x8x1xf32> to vector<2x8x8xf32>
    %244 = arith.subf %240, %243 : vector<2x8x8xf32>
    %245 = math.exp %244 : vector<2x8x8xf32>
    %cst_108 = arith.constant dense<0.000000e+00> : vector<2x8xf32>
    %246 = vector.multi_reduction <add>, %245, %cst_108 [2] : vector<2x8x8xf32> to vector<2x8xf32>
    %247 = vector.shape_cast %246 : vector<2x8xf32> to vector<2x8x1xf32>
    %248 = tpu.reciprocal %247 {approx = true} : vector<2x8x1xf32> -> vector<2x8x1xf32>
    %249 = vector.broadcast %248 : vector<2x8x1xf32> to vector<2x8x8xf32>
    %250 = arith.mulf %245, %249 : vector<2x8x8xf32>
    %251 = arith.truncf %250 : vector<2x8x8xf32> to vector<2x8x8xbf16>
    %cst_109 = arith.constant dense<0.000000e+00> : vector<2x8x16xf32>
    %252 = tpu.matmul %251, %235, %cst_109 {dimension_numbers = #tpu.dot_dimension_numbers<[2], [1], [1], [2], [0, 0, 0, 1, 1, 2], [0], [0]>} : vector<2x8x8xbf16>, vector<2x8x16xbf16>, vector<2x8x16xf32> -> vector<2x8x16xf32>
    %253 = vector.shape_cast %252 : vector<2x8x16xf32> to vector<16x16xf32>
    %c0_110 = arith.constant 0 : index
    %c16_111 = arith.constant 16 : index
    %254 = vector.load %arg19[%c0_110, %c16_111] : memref<16x32xf32, #tpu.memory_space<vmem>>, vector<16x16xf32>
    tpu.vector_store %arg19[%c0_110, %c16_111], %253 {strides = array<i32>} : memref<16x32xf32, #tpu.memory_space<vmem>>, vector<16x16xf32>,
    %c0_112 = arith.constant 0 : index
    %c0_113 = arith.constant 0 : index
    %255 = vector.load %arg19[%c0_112, %c0_113] : memref<16x32xf32, #tpu.memory_space<vmem>>, vector<16x32xf32>
    %256 = arith.truncf %255 : vector<16x32xf32> to vector<16x32xbf16>
    %c1_114 = arith.constant 1 : index
    %c0_115 = arith.constant 0 : index
    %c0_116 = arith.constant 0 : index
    %257 = vector.load %arg8[%c1_114, %c0_115, %c0_116] : memref<2x32x32xbf16, #tpu.memory_space<vmem>>, vector<1x32x32xbf16>
    %258 = vector.shape_cast %257 : vector<1x32x32xbf16> to vector<32x32xbf16>
    %cst_117 = arith.constant dense<0.000000e+00> : vector<16x32xf32>
    %259 = tpu.matmul %256, %258, %cst_117 {dimension_numbers = #tpu.dot_dimension_numbers<[1], [0], [0], [1], [0, 0, 1, 1], [], []>} : vector<16x32xbf16>, vector<32x32xbf16>, vector<16x32xf32> -> vector<16x32xf32>
    %260 = arith.addf %171, %259 : vector<16x32xf32>
    %c1_118 = arith.constant 1 : index
    %c0_119 = arith.constant 0 : index
    %c0_120 = arith.constant 0 : index
    %261 = vector.load %arg9[%c1_118, %c0_119, %c0_120] : memref<2x1x32xf32, #tpu.memory_space<vmem>>, vector<1x1x32xf32>
    %262 = vector.shape_cast %261 : vector<1x1x32xf32> to vector<1x32xf32>
    %263 = vector.broadcast %262 : vector<1x32xf32> to vector<16x32xf32>
    %264 = arith.addf %260, %263 : vector<16x32xf32>
    %c1_121 = arith.constant 1 : index
    %c0_122 = arith.constant 0 : index
    %c0_123 = arith.constant 0 : index
    %265 = vector.load %arg10[%c1_121, %c0_122, %c0_123] : memref<2x1x32xf32, #tpu.memory_space<vmem>>, vector<1x1x32xf32>
    %266 = vector.shape_cast %265 : vector<1x1x32xf32> to vector<1x32xf32>
    %c1_124 = arith.constant 1 : index
    %c0_125 = arith.constant 0 : index
    %c0_126 = arith.constant 0 : index
    %267 = vector.load %arg11[%c1_124, %c0_125, %c0_126] : memref<2x1x32xf32, #tpu.memory_space<vmem>>, vector<1x1x32xf32>
    %268 = vector.shape_cast %267 : vector<1x1x32xf32> to vector<1x32xf32>
    %cst_127 = arith.constant dense<0.000000e+00> : vector<16xf32>
    %269 = vector.multi_reduction <add>, %264, %cst_127 [1] : vector<16x32xf32> to vector<16xf32>
    %270 = vector.shape_cast %269 : vector<16xf32> to vector<16x1xf32>
    %cst_128 = arith.constant 3.200000e+01 : f32
    %271 = vector.broadcast %cst_128 : f32 to vector<16x1xf32>
    %272 = arith.divf %270, %271 : vector<16x1xf32>
    %273 = vector.broadcast %272 : vector<16x1xf32> to vector<16x32xf32>
    %274 = arith.subf %264, %273 : vector<16x32xf32>
    %275 = arith.mulf %274, %274 : vector<16x32xf32>
    %cst_129 = arith.constant dense<0.000000e+00> : vector<16xf32>
    %276 = vector.multi_reduction <add>, %275, %cst_129 [1] : vector<16x32xf32> to vector<16xf32>
    %277 = vector.shape_cast %276 : vector<16xf32> to vector<16x1xf32>
    %cst_130 = arith.constant 3.200000e+01 : f32
    %278 = vector.broadcast %cst_130 : f32 to vector<16x1xf32>
    %279 = arith.divf %277, %278 : vector<16x1xf32>
    %cst_131 = arith.constant 9.99999974E-6 : f32
    %280 = vector.broadcast %cst_131 : f32 to vector<16x1xf32>
    %281 = arith.addf %279, %280 : vector<16x1xf32>
    %282 = math.rsqrt %281 : vector<16x1xf32>
    %283 = vector.broadcast %282 : vector<16x1xf32> to vector<16x32xf32>
    %284 = arith.mulf %274, %283 : vector<16x32xf32>
    %285 = vector.broadcast %266 : vector<1x32xf32> to vector<16x32xf32>
    %286 = arith.mulf %284, %285 : vector<16x32xf32>
    %287 = vector.broadcast %268 : vector<1x32xf32> to vector<16x32xf32>
    %288 = arith.addf %286, %287 : vector<16x32xf32>
    %289 = arith.truncf %288 : vector<16x32xf32> to vector<16x32xbf16>
    %c1_132 = arith.constant 1 : index
    %c0_133 = arith.constant 0 : index
    %c0_134 = arith.constant 0 : index
    %290 = vector.load %arg12[%c1_132, %c0_133, %c0_134] : memref<2x32x128xbf16, #tpu.memory_space<vmem>>, vector<1x32x128xbf16>
    %291 = vector.shape_cast %290 : vector<1x32x128xbf16> to vector<32x128xbf16>
    %cst_135 = arith.constant dense<0.000000e+00> : vector<16x128xf32>
    %292 = tpu.matmul %289, %291, %cst_135 {dimension_numbers = #tpu.dot_dimension_numbers<[1], [0], [0], [1], [0, 0, 1, 1], [], []>} : vector<16x32xbf16>, vector<32x128xbf16>, vector<16x128xf32> -> vector<16x128xf32>
    %c1_136 = arith.constant 1 : index
    %c0_137 = arith.constant 0 : index
    %c0_138 = arith.constant 0 : index
    %293 = vector.load %arg13[%c1_136, %c0_137, %c0_138] : memref<2x1x128xf32, #tpu.memory_space<vmem>>, vector<1x1x128xf32>
    %294 = vector.shape_cast %293 : vector<1x1x128xf32> to vector<1x128xf32>
    %295 = vector.broadcast %294 : vector<1x128xf32> to vector<16x128xf32>
    %296 = arith.addf %292, %295 : vector<16x128xf32>
    %cst_139 = arith.constant 5.000000e-01 : f32
    %297 = vector.broadcast %cst_139 : f32 to vector<16x128xf32>
    %298 = arith.mulf %297, %296 : vector<16x128xf32>
    %cst_140 = arith.constant 4.471500e-02 : f32
    %299 = vector.broadcast %cst_140 : f32 to vector<16x128xf32>
    %300 = arith.mulf %299, %296 : vector<16x128xf32>
    %301 = arith.mulf %300, %296 : vector<16x128xf32>
    %302 = arith.mulf %301, %296 : vector<16x128xf32>
    %303 = arith.addf %296, %302 : vector<16x128xf32>
    %cst_141 = arith.constant 0.797884583 : f32
    %304 = vector.broadcast %cst_141 : f32 to vector<16x128xf32>
    %305 = arith.mulf %304, %303 : vector<16x128xf32>
    %306 = math.tanh %305 : vector<16x128xf32>
    %cst_142 = arith.constant 1.000000e+00 : f32
    %307 = vector.broadcast %cst_142 : f32 to vector<16x128xf32>
    %308 = arith.addf %307, %306 : vector<16x128xf32>
    %309 = arith.mulf %298, %308 : vector<16x128xf32>
    %310 = arith.truncf %309 : vector<16x128xf32> to vector<16x128xbf16>
    %c1_143 = arith.constant 1 : index
    %c0_144 = arith.constant 0 : index
    %c0_145 = arith.constant 0 : index
    %311 = vector.load %arg14[%c1_143, %c0_144, %c0_145] : memref<2x128x32xbf16, #tpu.memory_space<vmem>>, vector<1x128x32xbf16>
    %312 = vector.shape_cast %311 : vector<1x128x32xbf16> to vector<128x32xbf16>
    %cst_146 = arith.constant dense<0.000000e+00> : vector<16x32xf32>
    %313 = tpu.matmul %310, %312, %cst_146 {dimension_numbers = #tpu.dot_dimension_numbers<[1], [0], [0], [1], [0, 0, 1, 1], [], []>} : vector<16x128xbf16>, vector<128x32xbf16>, vector<16x32xf32> -> vector<16x32xf32>
    %c1_147 = arith.constant 1 : index
    %c0_148 = arith.constant 0 : index
    %c0_149 = arith.constant 0 : index
    %314 = vector.load %arg15[%c1_147, %c0_148, %c0_149] : memref<2x1x32xf32, #tpu.memory_space<vmem>>, vector<1x1x32xf32>
    %315 = vector.shape_cast %314 : vector<1x1x32xf32> to vector<1x32xf32>
    %316 = vector.broadcast %315 : vector<1x32xf32> to vector<16x32xf32>
    %317 = arith.addf %313, %316 : vector<16x32xf32>
    %318 = arith.addf %264, %317 : vector<16x32xf32>
    %c0_150 = arith.constant 0 : index
    %c0_151 = arith.constant 0 : index
    %319 = vector.load %arg16[%c0_150, %c0_151] : memref<1x32xf32, #tpu.memory_space<vmem>>, vector<1x32xf32>
    %c0_152 = arith.constant 0 : index
    %c0_153 = arith.constant 0 : index
    %320 = vector.load %arg17[%c0_152, %c0_153] : memref<1x32xf32, #tpu.memory_space<vmem>>, vector<1x32xf32>
    %cst_154 = arith.constant dense<0.000000e+00> : vector<16xf32>
    %321 = vector.multi_reduction <add>, %318, %cst_154 [1] : vector<16x32xf32> to vector<16xf32>
    %322 = vector.shape_cast %321 : vector<16xf32> to vector<16x1xf32>
    %cst_155 = arith.constant 3.200000e+01 : f32
    %323 = vector.broadcast %cst_155 : f32 to vector<16x1xf32>
    %324 = arith.divf %322, %323 : vector<16x1xf32>
    %325 = vector.broadcast %324 : vector<16x1xf32> to vector<16x32xf32>
    %326 = arith.subf %318, %325 : vector<16x32xf32>
    %327 = arith.mulf %326, %326 : vector<16x32xf32>
    %cst_156 = arith.constant dense<0.000000e+00> : vector<16xf32>
    %328 = vector.multi_reduction <add>, %327, %cst_156 [1] : vector<16x32xf32> to vector<16xf32>
    %329 = vector.shape_cast %328 : vector<16xf32> to vector<16x1xf32>
    %cst_157 = arith.constant 3.200000e+01 : f32
    %330 = vector.broadcast %cst_157 : f32 to vector<16x1xf32>
    %331 = arith.divf %329, %330 : vector<16x1xf32>
    %cst_158 = arith.constant 9.99999974E-6 : f32
    %332 = vector.broadcast %cst_158 : f32 to vector<16x1xf32>
    %333 = arith.addf %331, %332 : vector<16x1xf32>
    %334 = math.rsqrt %333 : vector<16x1xf32>
    %335 = vector.broadcast %334 : vector<16x1xf32> to vector<16x32xf32>
    %336 = arith.mulf %326, %335 : vector<16x32xf32>
    %337 = vector.broadcast %319 : vector<1x32xf32> to vector<16x32xf32>
    %338 = arith.mulf %336, %337 : vector<16x32xf32>
    %339 = vector.broadcast %320 : vector<1x32xf32> to vector<16x32xf32>
    %340 = arith.addf %338, %339 : vector<16x32xf32>
    %341 = arith.truncf %340 : vector<16x32xf32> to vector<16x32xbf16>
    %c0_159 = arith.constant 0 : index
    %c0_160 = arith.constant 0 : index
    %342 = vector.load %arg2[%c0_159, %c0_160] : memref<128x32xbf16, #tpu.memory_space<vmem>>, vector<128x32xbf16>
    %cst_161 = arith.constant dense<0.000000e+00> : vector<16x128xf32>
    %343 = tpu.matmul %341, %342, %cst_161 {dimension_numbers = #tpu.dot_dimension_numbers<[1], [1], [0], [0], [0, 0, 1, 0], [], []>} : vector<16x32xbf16>, vector<128x32xbf16>, vector<16x128xf32> -> vector<16x128xf32>
    %c0_162 = arith.constant 0 : index
    %c0_163 = arith.constant 0 : index
    %344 = vector.load %arg18[%c0_162, %c0_163] : memref<16x128xf32, #tpu.memory_space<vmem>>, vector<16x128xf32>
    tpu.vector_store %arg18[%c0_162, %c0_163], %343 {strides = array<i32>} : memref<16x128xf32, #tpu.memory_space<vmem>>, vector<16x128xf32>,
    return
  }
}

</mosaic_0001>

<bundles_post_ra>
// kernel: gpt2_forward.1
= control target key start
LH: loop header
LB: loop body
LE: loop exit
PB: predicated region body
PF: predicated region fallthrough
CT: control target
= control target key end

     0   :  { %v1917_v0 = vmov 0   ;;  %v64_v14 = vlaneseq  ;;  %v1918_v20 = vmov 0.0   ;;  %vm112_vm5 = vcmask 130048   ;;  %s1922_s23 = smov 96   ;;  %s1923_s24 = smov 80   ;;  %s2464_s1 = inlined_call_operand.vmem [shape: s32[16,1], index: 1, kind: input, shape index: {}]   ;;  %s2465_s0 = inlined_call_operand.vmem [shape: s32[16,1], index: 0, kind: input, shape index: {}]   ;;  %s2466_s2 = inlined_call_operand.vmem [shape: bf16[128,32], index: 2, kind: input, shape index: {}]   ;;  %s2467_s3 = inlined_call_operand.vmem [shape: bf16[16,32], index: 3, kind: input, shape index: {}]   ;;  %s2468_s4 = inlined_call_operand.vmem [shape: f32[2,1,32], index: 4, kind: input, shape index: {}]   ;;  %s2469_s5 = inlined_call_operand.vmem [shape: f32[2,1,32], index: 5, kind: input, shape index: {}]   ;;  %s2470_s7 = inlined_call_operand.vmem [shape: f32[2,1,96], index: 7, kind: input, shape index: {}]   ;;  %s2471_s6 = inlined_call_operand.vmem [shape: bf16[2,32,96], index: 6, kind: input, shape index: {}]   ;;  %s2472_s9 = inlined_call_operand.vmem [shape: f32[2,1,32], index: 9, kind: input, shape index: {}]   ;;  %s2473_s8 = inlined_call_operand.vmem [shape: bf16[2,32,32], index: 8, kind: input, shape index: {}]   ;;  %s2474_s10 = inlined_call_operand.vmem [shape: f32[2,1,32], index: 10, kind: input, shape index: {}]   ;;  %s2475_s11 = inlined_call_operand.vmem [shape: f32[2,1,32], index: 11, kind: input, shape index: {}]   ;;  %s2476_s13 = inlined_call_operand.vmem [shape: f32[2,1,128], index: 13, kind: input, shape index: {}]   ;;  %s2477_s12 = inlined_call_operand.vmem [shape: bf16[2,32,128], index: 12, kind: input, shape index: {}]   ;;  %s2478_s15 = inlined_call_operand.vmem [shape: f32[2,1,32], index: 15, kind: input, shape index: {}]   ;;  %s2479_s14 = inlined_call_operand.vmem [shape: bf16[2,128,32], index: 14, kind: input, shape index: {}]   ;;  %s2480_s16 = inlined_call_operand.vmem [shape: f32[1,32], index: 16, kind: input, shape index: {}]   ;;  %s2481_s17 = inlined_call_operand.vmem [shape: f32[1,32], index: 17, kind: input, shape index: {}]   ;;  %s2482_s18 = inlined_call_operand.vmem [shape: f32[16,128], index: 18, kind: output, shape index: {}]  }
   0x1   :  { %2488 = sst [smem:[#allocation3_spill]] %s2464_s1  ;;  %1836 = vset.pattern.permute.xlu1 %v1917_v0  ;;  %1835 = vset.pattern.permute.xlu0 %v1917_v0  ;;  %v1788_v13 = vld [vmem:[%s2467_s3] sm:$0xff]  ;;  %v1919_v24 = vmov 1.0|1.0   ;;  %vm197_vm6 = vcmask 261120   ;;  %v1920_v33 = vmov 32.0  }
   0x2   :  { %2489 = sst [smem:[#allocation4_spill]] %s2465_s0  ;;  %123 = vmatpush.bf16.msra.mxu0 %v1788_v13  ;;  %v2062_v17 = vand.u32 127, %v64_v14  ;;  %1855 = vrcp.f32 %v1920_v33  ;;  %v1790_v50 = vld [vmem:[%s2471_s6 + $0x8] sm:$0xff]  ;;  %v1789_v52 = vld [vmem:[%s2471_s6] sm:$0xff]  ;;  %vm381_vm14 = vcmask 1043456   ;;  %s1924_s25 = smov 112  }
   0x3   :  { %2490 = sst [smem:[#allocation5_spill]] %s2466_s2  ;;  %289 = vmatpush.bf16.msra.mxu2 %v1790_v50  ;;  %s1921_s2 = smov 64  }
   0x4   :  { %s2491_s29 = sld [smem:[#allocation3_spill]]  ;;  %s1925_s26 = smov 48  }
   0x5   :  { %s2492_s19 = sld [smem:[#allocation4_spill]]  ;;  %s2486_s3 = smov 16  }
   0x6   :  { %s2493_s21 = sld [smem:[#allocation5_spill]] }
   0x7   :  { %290 = vmatpush.bf16.msra.mxu2 %v1789_v52 }
   0x8   :  { %v1856_v34 = vpop.eup %1855 }
   0x9   :  { %v205_v35 = vmul.f32 32.0, %v1856_v34  ;;  %vm209_vm7 = vweird.f32 %v1856_v34 }
   0xa   :  { %v62_v1 = vld [vmem:[%s2491_s29] sm:$0xff]  ;;  %v63_v5 = vld [vmem:[%s2491_s29 + $0x8] sm:$0xff] }
   0xb   :  { %v60_v2 = vld [vmem:[%s2492_s19] sm:$0xff]  ;;  %78 = vperm.xlu0 %1835, %v62_v1   ;;  %v61_v6 = vld [vmem:[%s2492_s19 + $0x8] sm:$0xff]  ;;  %v206_v36 = vsub.f32 1.0, %v205_v35 }
   0xc   :  { %67 = vperm.xlu1 %1836, %v60_v2   ;;  %v1787_v3 = vld [vmem:[%s2493_s21 + $0x38] sm:$0xff]  ;;  %v1786_v4 = vld [vmem:[%s2493_s21 + $0x30] sm:$0xff]  ;;  %v1785_v7 = vld [vmem:[%s2493_s21 + $0x28] sm:$0xff] }
   0xd   :  { %178 = vmatpush.bf16.msra.mxu1 %v1787_v3  ;;  %v1784_v8 = vld [vmem:[%s2493_s21 + $0x20] sm:$0xff]  ;;  %v1783_v9 = vld [vmem:[%s2493_s21 + $0x18] sm:$0xff]  ;;  %v1782_v10 = vld [vmem:[%s2493_s21 + $0x10] sm:$0xff]  ;;  %v207_v37 = vmul.f32 %v1856_v34, %v206_v36 }
   0xe   :  { %v1781_v11 = vld [vmem:[%s2493_s21 + $0x8] sm:$0xff]  ;;  %v1780_v12 = vld [vmem:[%s2493_s21] sm:$0xff] }
   0xf   :  { %v208_v38 = vadd.f32 %v1856_v34, %v207_v37 }
  0x11   :  { %179 = vmatpush.bf16.msra.mxu1 %v1786_v4  ;;  %v2077_v39 = vsel %vm209_vm7, %v1856_v34, %v208_v38  ;;  %v193_v38 = vshrl.u32 %v64_v14, 7 }
  0x13   :  { %81 = vperm.xlu0 %1835, %v63_v5   ;;  %vm2122_vm15 = vcmp.le.s32.totalorder %v2062_v17, %v193_v38 }
  0x14   :  { %70 = vperm.xlu1 %1836, %v61_v6  }
  0x15   :  { %180 = vmatpush.bf16.msra.mxu1 %v1785_v7  ;;  %v1837_v7 = vld [vmem:[%s2468_s4] ss:$0 sm:$0xff] }
  0x19   :  { %181 = vmatpush.bf16.msra.mxu1 %v1784_v8 }
  0x1d   :  { %182 = vmatpush.bf16.msra.mxu1 %v1783_v9 }
  0x21   :  { %183 = vmatpush.bf16.msra.mxu1 %v1782_v10 }
  0x25   :  { %184 = vmatpush.bf16.msra.mxu1 %v1781_v11 }
  0x29   :  { %185 = vmatpush.bf16.msra.mxu1 %v1780_v12  ;;  %v1838_v12 = vld [vmem:[%s2469_s5] ss:$0 sm:$0xff] }
  0x7d   :  { %v79_v15 = vpop.permute.xlu0 %78 }
  0x7e   :  { %v68_v16 = vpop.permute.xlu1 %67  ;;  %vm83_vm0 = vcmp.eq.s32.totalorder %v79_v15, %v2062_v17 }
  0x7f   :  { %vm72_vm1 = vcmp.eq.s32.totalorder %v68_v16, %v2062_v17  ;;  %v85_v21 = vsel %vm83_vm0, 1.0, %v1918_v20  ;;  %vm351_vm0 = vcmask 64512  }
  0x85   :  { %v82_v18 = vpop.permute.xlu0 %81 }
  0x86   :  { %v71_v19 = vpop.permute.xlu1 %70  ;;  %vm84_vm2 = vcmp.eq.s32.totalorder %v82_v18, %v2062_v17 }
  0x87   :  { %vm73_vm3 = vcmp.eq.s32.totalorder %v71_v19, %v2062_v17  ;;  %v86_v22 = vsel %vm84_vm2, 1.0, %v1918_v20  ;;  %v1841_v20 = vld [vmem:[%s2470_s7] ss:$0 sm:$0xff] }
  0x88   :  { %vm1575_vm4 = vmpackc.low %vm73_vm3, %vm72_vm1  ;;  %v87_v23 = vpack.c.bf16 %v86_v22, %v85_v21  ;;  %vm543_vm1 = vcmask 261248  }
  0x89   :  { %1576 = vmatmul.msk.bf16.vlgmr.msra.gmra.mxu1 %vm1575_vm4, %v1919_v24 }
  0x8a   :  { %1542 = vmatmul.msk.bf16.vlgmr.msra.gmra.mxu0 %vm112_vm5, %v87_v23 }
 0x106   :  { %v187_v25 = vpop.f32.mrf.mxu1 }
 0x107   :  { %v125_v26 = vpop.f32.mrf.mxu0 }
 0x108   :  { %v2069_v27 = vadd.f32 %v187_v25, %v125_v26 }
 0x10a   :  { %v198_v28 = vsel %vm197_vm6, %v2069_v27, 0.0 }
 0x10b   :  { %199 = vadd.xlane.f32.xlu2 %v198_v28 }
 0x10e   :  { %v189_v29 = vpop.f32.mrf.mxu1 }
 0x10f   :  { %v127_v30 = vpop.f32.mrf.mxu0 }
 0x110   :  { %v2073_v31 = vadd.f32 %v189_v29, %v127_v30 }
 0x112   :  { %v201_v32 = vsel %vm197_vm6, %v2073_v31, 0.0 }
 0x113   :  { %202 = vadd.xlane.f32.xlu2 %v201_v32 }
 0x17e   :  { %v200_v40 = vpop.xlane.xlu2 %199 }
 0x17f   :  { %v211_v41 = vmul.f32 %v2077_v39, %v200_v40 }
 0x181   :  { %v213_v42 = vsub.f32 %v2069_v27, %v211_v41 }
 0x183   :  { %v215_v43 = vmul.f32 %v213_v42, %v213_v42 }
 0x185   :  { %v217_v44 = vsel %vm197_vm6, %v215_v43, 0.0 }
 0x186   :  { %218 = vadd.xlane.f32.xlu0 %v217_v44  ;;  %v203_v45 = vpop.xlane.xlu2 %202 }
 0x187   :  { %v212_v46 = vmul.f32 %v2077_v39, %v203_v45 }
 0x189   :  { %v214_v47 = vsub.f32 %v2073_v31, %v212_v46 }
 0x18b   :  { %v216_v48 = vmul.f32 %v214_v47, %v214_v47 }
 0x18d   :  { %v220_v49 = vsel %vm197_vm6, %v216_v48, 0.0 }
 0x18e   :  { %221 = vadd.xlane.f32.xlu1 %v220_v49 }
 0x1f9   :  { %v219_v51 = vpop.xlane.xlu0 %218 }
 0x1fa   :  { %v223_v53 = vmul.f32 %v219_v51, %v2077_v39 }
 0x1fc   :  { %v225_v54 = vadd.f32 1e-05, %v223_v53 }
 0x1fe   :  { %1857 = vrsqrt.f32 %v225_v54  ;;  %vm233_vm9 = vweird.f32 %v225_v54 }
 0x201   :  { %v222_v55 = vpop.xlane.xlu1 %221 }
 0x202   :  { %v224_v56 = vmul.f32 %v222_v55, %v2077_v39 }
 0x204   :  { %v1858_v57 = vpop.eup %1857  ;;  %v226_v58 = vadd.f32 1e-05, %v224_v56 }
 0x205   :  { %v228_v59 = vmul.f32 %v1858_v57, %v225_v54  ;;  %vm234_vm8 = vweird.f32 %v1858_v57 }
 0x206   :  { %1859 = vrsqrt.f32 %v226_v58  ;;  %vm235_vm10 = vmor %vm233_vm9, %vm234_vm8  ;;  %vm243_vm12 = vweird.f32 %v226_v58 }
 0x207   :  { %v229_v60 = vmul.f32 %v1858_v57, %v228_v59 }
 0x209   :  { %v230_v61 = vmul.f32 0.5, %v229_v60 }
 0x20b   :  { %v231_v62 = vsub.f32 1.5, %v230_v61 }
 0x20c   :  { %v1860_v63 = vpop.eup %1859 }
 0x20d   :  { %v232_v0 = vmul.f32 %v1858_v57, %v231_v62  ;;  %v238_v1 = vmul.f32 %v1860_v63, %v226_v58  ;;  %vm244_vm11 = vweird.f32 %v1860_v63 }
 0x20e   :  { %vm245_vm13 = vmor %vm243_vm12, %vm244_vm11 }
 0x20f   :  { %v239_v2 = vmul.f32 %v1860_v63, %v238_v1  ;;  %v236_v3 = vsel %vm235_vm10, %v1858_v57, %v232_v0 }
 0x210   :  { %v247_v6 = vmul.f32 %v236_v3, %v213_v42 }
 0x211   :  { %v240_v4 = vmul.f32 0.5, %v239_v2 }
 0x212   :  { %v252_v11 = vmul.f32 %v1837_v7, %v247_v6 }
 0x213   :  { %v241_v5 = vsub.f32 1.5, %v240_v4 }
 0x214   :  { %v257_v15 = vadd.f32 %v1838_v12, %v252_v11 }
 0x215   :  { %v242_v8 = vmul.f32 %v1860_v63, %v241_v5 }
 0x217   :  { %v246_v9 = vsel %vm245_vm13, %v1860_v63, %v242_v8 }
 0x218   :  { %v248_v10 = vmul.f32 %v246_v9, %v214_v47 }
 0x21a   :  { %v253_v13 = vmul.f32 %v1837_v7, %v248_v10 }
 0x21c   :  { %v258_v16 = vadd.f32 %v1838_v12, %v253_v13 }
 0x21e   :  { %v259_v18 = vpack.c.bf16 %v258_v16, %v257_v15 }
 0x220   :  { %1585 = vmatmul.msk.bf16.vlgmr.msra.gmra.mxu2 %vm197_vm6, %v259_v18 }
 0x2a3   :  { %v292_v19 = vpop.f32.mrf.mxu2 }
 0x2a4   :  { %v293_v23 = vadd.f32 %v1841_v20, %v292_v19 }
 0x2a6   :  { %v297_v26 = vpack.c.bf16 %v293_v23, %v293_v23 }
 0x2a8   :  { %v300_v29 = vunpack.c.l.b16 %v297_v26 }
 0x2aa   :  { %v2109_v30 = vpack.c.b16 %v300_v29, %v300_v29 }
 0x2ab   :  { %v294_v21 = vpop.f32.mrf.mxu2 }
 0x2ac   :  { %v295_v22 = vadd.f32 %v1841_v20, %v294_v21 }
 0x2ae   :  { %v298_v24 = vpack.c.bf16 %v295_v22, %v295_v22 }
 0x2b0   :  { %v324_v25 = vunpack.c.l.b16 %v298_v24 }
 0x2b2   :  { %v2103_v28 = vpack.c.b16 %v324_v25, %v324_v25 }
 0x2b4   :  { %398 = vrot.lane.b32.xlu1 %v2103_v28, %s1921_s2  ;;  %326 = vrot.lane.b32.xlu2 %v2103_v28, %s1922_s23 }
 0x2bc   :  { %446 = vrot.lane.b32.xlu1 %v2103_v28, %s1923_s24  ;;  %302 = vrot.lane.b32.xlu2 %v2109_v30, %s1922_s23 }
 0x30e   :  { %v327_v32 = vpop.permute.xlu2 %326 }
 0x30f   :  { %v332_v33 = vsel %vm112_vm5, %v327_v32, 0 }
 0x310   :  { %341 = vmatpush.bf16.xpose.msrb.mxu2 %v332_v33 }
 0x316   :  { %v303_v34 = vpop.permute.xlu2 %302 }
 0x317   :  { %1587 = vmatmul.msk.bf16.vlgmr.msrb.gmra.mxu2 %vm112_vm5, %v298_v24  ;;  %v308_v35 = vsel %vm112_vm5, %v303_v34, 0 }
 0x318   :  { %317 = vmatpush.bf16.xpose.msra.mxu3 %v308_v35 }
 0x31f   :  { %1586 = vmatmul.msk.bf16.vlgmr.msra.gmra.mxu3 %vm112_vm5, %v297_v26 }
 0x326   :  { %v399_v36 = vpop.permute.xlu1 %398 }
 0x327   :  { %v404_v37 = vsel %vm381_vm14, %v399_v36, 0 }
 0x328   :  { %413 = vmatpush.bf16.msrb.mxu3 %v404_v37 }
 0x32e   :  { %v447_v59 = vpop.permute.xlu1 %446 }
 0x32f   :  { %v452_v62 = vsel %vm112_vm5, %v447_v59, 0 }
 0x39a   :  { %v343_v41 = vpop.f32.mrf.mxu2 }
 0x39b   :  { %v350_v42 = vsel %vm2122_vm15, %v343_v41, -1e+30 }
 0x39c   :  { %v355_v43 = vsel %vm351_vm0, %v350_v42, -inf }
 0x39d   :  { %356 = vmax.xlane.f32.xlu2 %v355_v43 }
 0x3a2   :  { %v319_v44 = vpop.f32.mrf.mxu3  ;;  %v345_v45 = vpop.f32.mrf.mxu2 }
 0x3a3   :  { %v349_v46 = vsel %vm2122_vm15, %v319_v44, -1e+30 }
 0x3a4   :  { %v352_v14 = vsel %vm351_vm0, %v349_v46, -inf }
 0x3a5   :  { %353 = vmax.xlane.f32.xlu0 %v352_v14 }
 0x3aa   :  { %v321_v17 = vpop.f32.mrf.mxu3 }
 0x3b5   :  { %423 = vrot.lane.b32.xlu2 %v2109_v30, %s1923_s24 }
 0x3b9   :  { %376 = vrot.lane.b32.xlu0 %v2109_v30, %s1921_s2 }
 0x410   :  { %v357_v47 = vpop.xlane.xlu2 %356 }
 0x411   :  { %v359_v48 = vsub.f32 %v350_v42, %v357_v47 }
 0x413   :  { %v362_v49 = vmul.f32 1.442695, %v359_v48 }
 0x415   :  { %1861 = vpow2.f32 %v362_v49 }
 0x418   :  { %v354_v50 = vpop.xlane.xlu0 %353  ;;  %v424_v51 = vpop.permute.xlu2 %423 }
 0x419   :  { %v358_v52 = vsub.f32 %v349_v46, %v354_v50  ;;  %v429_v53 = vsel %vm112_vm5, %v424_v51, 0 }
 0x41a   :  { %438 = vmatpush.bf16.xpose.msra.mxu3 %v429_v53  ;;  %v1791_v53 = vld [vmem:[%s2473_s8] sm:$0xff] }
 0x41b   :  { %v1862_v54 = vpop.eup %1861  ;;  %v360_v55 = vmul.f32 1.442695, %v358_v52  ;;  %v1792_v52 = vld [vmem:[%s2473_s8 + $0x8] sm:$0xff] }
 0x41c   :  { %v367_v56 = vsel %vm351_vm0, %v1862_v54, 0.0  ;;  %574 = vmatpush.bf16.msrb.mxu0 %v1792_v52  ;;  %v1796_v52 = vld [vmem:[%s2479_s14 + $0x8] sm:$0xff] }
 0x41d   :  { %1863 = vpow2.f32 %v360_v55  ;;  %368 = vadd.xlane.f32.xlu1 %v367_v56 }
 0x420   :  { %575 = vmatpush.bf16.msrb.mxu0 %v1791_v53  ;;  %v1795_v53 = vld [vmem:[%s2479_s14] sm:$0xff] }
 0x423   :  { %v1864_v57 = vpop.eup %1863 }
 0x424   :  { %v364_v58 = vsel %vm351_vm0, %v1864_v57, 0.0 }
 0x425   :  { %365 = vadd.xlane.f32.xlu0 %v364_v58  ;;  %v1842_v58 = vld [vmem:[%s2472_s9] ss:$0 sm:$0xff] }
 0x42b   :  { %v377_v60 = vpop.permute.xlu0 %376 }
 0x42c   :  { %v383_v61 = vsel %vm381_vm14, %v377_v60, 0 }
 0x42d   :  { %392 = vmatpush.bf16.msra.mxu2 %v383_v61 }
 0x431   :  { %461 = vmatpush.bf16.xpose.msrb.mxu2 %v452_v62 }
 0x436   :  { %444 = vrot.lane.b32.xlu1 %v2103_v28, %s1924_s25 }
 0x439   :  { %421 = vrot.lane.b32.xlu0 %v2109_v30, %s1924_s25 }
 0x490   :  { %v369_v63 = vpop.xlane.xlu1 %368 }
 0x491   :  { %1865 = vrcp.f32 %v369_v63 }
 0x497   :  { %v1866_v0 = vpop.eup %1865 }
 0x498   :  { %v373_v1 = vmul.f32 %v1866_v0, %v1862_v54  ;;  %v366_v2 = vpop.xlane.xlu0 %365 }
 0x499   :  { %1867 = vrcp.f32 %v366_v2 }
 0x49a   :  { %v375_v3 = vpack.c.bf16 %v373_v1, %v373_v1 }
 0x49c   :  { %1589 = vmatmul.msk.bf16.vlgmr.msrb.gmra.mxu3 %vm351_vm0, %v375_v3 }
 0x49f   :  { %v1868_v4 = vpop.eup %1867 }
 0x4a0   :  { %v372_v5 = vmul.f32 %v1868_v4, %v1864_v57 }
 0x4a2   :  { %v374_v6 = vpack.c.bf16 %v372_v5, %v372_v5 }
 0x4a4   :  { %1588 = vmatmul.msk.bf16.vlgmr.msra.gmra.mxu2 %vm351_vm0, %v374_v6 }
 0x4a8   :  { %v445_v8 = vpop.permute.xlu1 %444 }
 0x4ab   :  { %v422_v7 = vpop.permute.xlu0 %421 }
 0x4ac   :  { %1590 = vmatmul.msk.bf16.vlgmr.msra.gmra.mxu3 %vm112_vm5, %v422_v7 }
 0x4b4   :  { %1591 = vmatmul.msk.bf16.vlgmr.msrb.gmra.mxu2 %vm112_vm5, %v445_v8 }
 0x51f   :  { %v415_v9 = vpop.f32.mrf.mxu3 }
 0x520   :  { %420 = vst.msk [vmem:[#allocation2 + $0x8] sm:$0xff] %vm112_vm5, %v415_v9 }
 0x527   :  { %v394_v10 = vpop.f32.mrf.mxu2  ;;  %v417_v11 = vpop.f32.mrf.mxu3 }
 0x528   :  { %419 = vst.msk [vmem:[#allocation2] sm:$0xff] %vm112_vm5, %v394_v10  ;;  %v1794_v11 = vld [vmem:[%s2477_s12 + $0x8] sm:$0xff] }
 0x529   :  { %676 = vmatpush.bf16.msra.mxu2 %v1794_v11 }
 0x52f   :  { %v396_v12 = vpop.f32.mrf.mxu2  ;;  %v440_v13 = vpop.f32.mrf.mxu3 }
 0x530   :  { %v467_v15 = vsel %vm2122_vm15, %v440_v13, -1e+30 }
 0x531   :  { %v469_v16 = vsel %vm351_vm0, %v467_v15, -inf }
 0x532   :  { %470 = vmax.xlane.f32.xlu0 %v469_v16 }
 0x537   :  { %v442_v18 = vpop.f32.mrf.mxu3  ;;  %v463_v19 = vpop.f32.mrf.mxu2 }
 0x538   :  { %v468_v20 = vsel %vm2122_vm15, %v463_v19, -1e+30 }
 0x539   :  { %v472_v21 = vsel %vm351_vm0, %v468_v20, -inf }
 0x53a   :  { %473 = vmax.xlane.f32.xlu1 %v472_v21 }
 0x53f   :  { %v465_v22 = vpop.f32.mrf.mxu2 }
 0x553   :  { %493 = vrot.lane.b32.xlu1 %v2109_v30, %s1925_s26 }
 0x5a5   :  { %v471_v23 = vpop.xlane.xlu0 %470 }
 0x5a6   :  { %v475_v24 = vsub.f32 %v467_v15, %v471_v23  ;;  %v1793_v15 = vld [vmem:[%s2477_s12] sm:$0xff] }
 0x5a7   :  { %677 = vmatpush.bf16.msra.mxu2 %v1793_v15  ;;  %v1846_v15 = vld [vmem:[%s2478_s15] ss:$0 sm:$0xff] }
 0x5a8   :  { %v477_v25 = vmul.f32 1.442695, %v475_v24 }
 0x5aa   :  { %1869 = vpow2.f32 %v477_v25 }
 0x5ad   :  { %v474_v26 = vpop.xlane.xlu1 %473 }
 0x5ae   :  { %v476_v29 = vsub.f32 %v468_v20, %v474_v26 }
 0x5b0   :  { %v1870_v32 = vpop.eup %1869  ;;  %v479_v33 = vmul.f32 1.442695, %v476_v29 }
 0x5b1   :  { %v481_v34 = vsel %vm351_vm0, %v1870_v32, 0.0 }
 0x5b2   :  { %1871 = vpow2.f32 %v479_v33  ;;  %482 = vadd.xlane.f32.xlu2 %v481_v34 }
 0x5b8   :  { %v1872_v35 = vpop.eup %1871 }
 0x5b9   :  { %v484_v36 = vsel %vm351_vm0, %v1872_v35, 0.0 }
 0x5ba   :  { %485 = vadd.xlane.f32.xlu0 %v484_v36 }
 0x5c5   :  { %v494_v37 = vpop.permute.xlu1 %493 }
 0x5c6   :  { %v499_v38 = vsel %vm381_vm14, %v494_v37, 0  ;;  %v1843_v37 = vld [vmem:[%s2474_s10] ss:$0 sm:$0xff] }
 0x5c7   :  { %508 = vmatpush.bf16.msrb.mxu3 %v499_v38 }
 0x5ce   :  { %514 = vrot.lane.b32.xlu0 %v2103_v28, %s1925_s26 }
 0x625   :  { %v483_v30 = vpop.xlane.xlu2 %482 }
 0x626   :  { %1873 = vrcp.f32 %v483_v30 }
 0x62c   :  { %v1874_v41 = vpop.eup %1873 }
 0x62d   :  { %v489_v42 = vmul.f32 %v1874_v41, %v1870_v32  ;;  %v486_v44 = vpop.xlane.xlu0 %485 }
 0x62e   :  { %1875 = vrcp.f32 %v486_v44 }
 0x62f   :  { %v491_v43 = vpack.c.bf16 %v489_v42, %v489_v42  ;;  %v1844_v42 = vld [vmem:[%s2475_s11] ss:$0 sm:$0xff] }
 0x631   :  { %1592 = vmatmul.msk.bf16.vlgmr.msrb.gmra.mxu3 %vm351_vm0, %v491_v43 }
 0x634   :  { %v1876_v45 = vpop.eup %1875 }
 0x635   :  { %v490_v46 = vmul.f32 %v1876_v45, %v1872_v35 }
 0x637   :  { %v492_v47 = vpack.c.bf16 %v490_v46, %v490_v46 }
 0x640   :  { %v515_v14 = vpop.permute.xlu0 %514 }
 0x641   :  { %v520_v17 = vsel %vm381_vm14, %v515_v14, 0 }
 0x642   :  { %529 = vmatpush.bf16.msrb.mxu1 %v520_v17 }
 0x645   :  { %1593 = vmatmul.msk.bf16.vlgmr.msrb.gmra.mxu1 %vm351_vm0, %v492_v47  ;;  %v1802_v47 = vld [vmem:[%s2479_s14 + $0x38] sm:$0xff] }
 0x646   :  { %771 = vmatpush.bf16.msra.mxu3 %v1802_v47 }
 0x6b4   :  { %v510_v48 = vpop.f32.mrf.mxu3 }
 0x6b5   :  { %537 = vrot.lane.b32.xlu2 %v510_v48, %s2486_s3  ;;  %v1801_v48 = vld [vmem:[%s2479_s14 + $0x30] sm:$0xff] }
 0x6b6   :  { %772 = vmatpush.bf16.msra.mxu3 %v1801_v48 }
 0x6bc   :  { %v512_v28 = vpop.f32.mrf.mxu3 }
 0x6bd   :  { %v1800_v28 = vld [vmem:[%s2479_s14 + $0x28] sm:$0xff] }
 0x6be   :  { %773 = vmatpush.bf16.msra.mxu3 %v1800_v28 }
 0x6c2   :  { %v531_v49 = vpop.f32.mrf.mxu1 }
 0x6c3   :  { %539 = vrot.lane.b32.xlu0 %v531_v49, %s2486_s3  ;;  %v1799_v49 = vld [vmem:[%s2479_s14 + $0x20] sm:$0xff] }
 0x6c4   :  { %774 = vmatpush.bf16.msra.mxu3 %v1799_v49 }
 0x6ca   :  { %v533_v50 = vpop.f32.mrf.mxu1 }
 0x6cb   :  { %v1798_v50 = vld [vmem:[%s2479_s14 + $0x18] sm:$0xff] }
 0x6cc   :  { %775 = vmatpush.bf16.msra.mxu3 %v1798_v50 }
 0x70f   :  { %v538_v51 = vpop.permute.xlu2 %537 }
 0x710   :  { %544 = vst.msk [vmem:[#allocation2] sm:$0xff] %vm543_vm1, %v538_v51  ;;  %v1797_v51 = vld [vmem:[%s2479_s14 + $0x10] sm:$0xff] }
 0x711   :  { %776 = vmatpush.bf16.msra.mxu3 %v1797_v51 }
 0x715   :  { %777 = vmatpush.bf16.msra.mxu3 %v1796_v52 }
 0x717   :  { %v546_v55 = vld [vmem:[#allocation2] sm:$0xff] }
 0x719   :  { %778 = vmatpush.bf16.msra.mxu3 %v1795_v53 }
 0x735   :  { %v540_v54 = vpop.permute.xlu0 %539 }
 0x736   :  { %545 = vst.msk [vmem:[#allocation2 + $0x8] sm:$0xff] %vm543_vm1, %v540_v54  ;;  %v1845_v54 = vld [vmem:[%s2476_s13] ss:$0 sm:$0xff] }
 0x73d   :  { %v547_v56 = vld [vmem:[#allocation2 + $0x8] sm:$0xff] }
 0x73e   :  { %v548_v57 = vpack.c.bf16 %v547_v56, %v546_v55 }
 0x740   :  { %1602 = vmatmul.msk.bf16.vlgmr.msrb.gmra.mxu0 %vm197_vm6, %v548_v57 }
 0x7bd   :  { %v577_v59 = vpop.f32.mrf.mxu0 }
 0x7be   :  { %v582_v60 = vadd.f32 %v577_v59, %v2069_v27 }
 0x7c0   :  { %v2182_v61 = vadd.f32 %v1842_v58, %v582_v60 }
 0x7c2   :  { %v592_v62 = vsel %vm197_vm6, %v2182_v61, 0.0 }
 0x7c3   :  { %593 = vadd.xlane.f32.xlu1 %v592_v62 }
 0x7c5   :  { %v579_v63 = vpop.f32.mrf.mxu0 }
 0x7c6   :  { %v583_v0 = vadd.f32 %v579_v63, %v2073_v31 }
 0x7c8   :  { %v2187_v1 = vadd.f32 %v1842_v58, %v583_v0 }
 0x7ca   :  { %v595_v2 = vsel %vm197_vm6, %v2187_v1, 0.0 }
 0x7cb   :  { %596 = vadd.xlane.f32.xlu2 %v595_v2 }
 0x836   :  { %v594_v3 = vpop.xlane.xlu1 %593 }
 0x837   :  { %v598_v4 = vmul.f32 %v594_v3, %v2077_v39 }
 0x839   :  { %v600_v27 = vsub.f32 %v2182_v61, %v598_v4 }
 0x83b   :  { %v602_v5 = vmul.f32 %v600_v27, %v600_v27 }
 0x83d   :  { %v604_v6 = vsel %vm197_vm6, %v602_v5, 0.0 }
 0x83e   :  { %605 = vadd.xlane.f32.xlu0 %v604_v6  ;;  %v597_v7 = vpop.xlane.xlu2 %596 }
 0x83f   :  { %v599_v8 = vmul.f32 %v597_v7, %v2077_v39 }
 0x841   :  { %v601_v31 = vsub.f32 %v2187_v1, %v599_v8 }
 0x843   :  { %v603_v9 = vmul.f32 %v601_v31, %v601_v31 }
 0x845   :  { %v607_v10 = vsel %vm197_vm6, %v603_v9, 0.0 }
 0x846   :  { %608 = vadd.xlane.f32.xlu1 %v607_v10 }
 0x8b1   :  { %v606_v12 = vpop.xlane.xlu0 %605 }
 0x8b2   :  { %v610_v13 = vmul.f32 %v606_v12, %v2077_v39 }
 0x8b4   :  { %v612_v16 = vadd.f32 1e-05, %v610_v13 }
 0x8b6   :  { %1877 = vrsqrt.f32 %v612_v16  ;;  %vm620_vm3 = vweird.f32 %v612_v16 }
 0x8b9   :  { %v609_v18 = vpop.xlane.xlu1 %608 }
 0x8ba   :  { %v611_v19 = vmul.f32 %v609_v18, %v2077_v39 }
 0x8bc   :  { %v1878_v20 = vpop.eup %1877  ;;  %v613_v21 = vadd.f32 1e-05, %v611_v19 }
 0x8bd   :  { %v615_v22 = vmul.f32 %v1878_v20, %v612_v16  ;;  %vm621_vm2 = vweird.f32 %v1878_v20 }
 0x8be   :  { %1879 = vrsqrt.f32 %v613_v21  ;;  %vm622_vm4 = vmor %vm620_vm3, %vm621_vm2  ;;  %vm630_vm8 = vweird.f32 %v613_v21 }
 0x8bf   :  { %v616_v23 = vmul.f32 %v1878_v20, %v615_v22 }
 0x8c1   :  { %v617_v24 = vmul.f32 0.5, %v616_v23 }
 0x8c3   :  { %v618_v25 = vsub.f32 1.5, %v617_v24 }
 0x8c4   :  { %v1880_v26 = vpop.eup %1879 }
 0x8c5   :  { %v619_v29 = vmul.f32 %v1878_v20, %v618_v25  ;;  %v625_v32 = vmul.f32 %v1880_v26, %v613_v21  ;;  %vm631_vm7 = vweird.f32 %v1880_v26 }
 0x8c6   :  { %vm632_vm9 = vmor %vm630_vm8, %vm631_vm7 }
 0x8c7   :  { %v626_v33 = vmul.f32 %v1880_v26, %v625_v32  ;;  %v623_v34 = vsel %vm622_vm4, %v1878_v20, %v619_v29 }
 0x8c8   :  { %v634_v38 = vmul.f32 %v623_v34, %v600_v27 }
 0x8c9   :  { %v627_v35 = vmul.f32 0.5, %v626_v33 }
 0x8ca   :  { %v639_v43 = vmul.f32 %v1843_v37, %v634_v38 }
 0x8cb   :  { %v628_v36 = vsub.f32 1.5, %v627_v35 }
 0x8cc   :  { %v644_v46 = vadd.f32 %v1844_v42, %v639_v43 }
 0x8cd   :  { %v629_v30 = vmul.f32 %v1880_v26, %v628_v36 }
 0x8cf   :  { %v633_v41 = vsel %vm632_vm9, %v1880_v26, %v629_v30 }
 0x8d0   :  { %v635_v44 = vmul.f32 %v633_v41, %v601_v31  ;;  %v1803_v41 = vld [vmem:[%s2471_s6 + $0x10] sm:$0xff] }
 0x8d2   :  { %v640_v45 = vmul.f32 %v1843_v37, %v635_v44  ;;  %v1804_v37 = vld [vmem:[%s2471_s6 + $0x18] sm:$0xff] }
 0x8d3   :  { %877 = vmatpush.bf16.msra.mxu1 %v1804_v37 }
 0x8d4   :  { %v645_v14 = vadd.f32 %v1844_v42, %v640_v45 }
 0x8d6   :  { %v646_v17 = vpack.c.bf16 %v645_v14, %v644_v46 }
 0x8d7   :  { %878 = vmatpush.bf16.msra.mxu1 %v1803_v41 }
 0x8d8   :  { %1611 = vmatmul.msk.bf16.vlgmr.msra.gmra.mxu2 %vm197_vm6, %v646_v17 }
 0x95b   :  { %v679_v55 = vpop.f32.mrf.mxu2 }
 0x95c   :  { %v680_v56 = vadd.f32 %v1845_v54, %v679_v55  ;;  %v1839_v55 = vld [vmem:[%s2468_s4 + $0x1] ss:$0 sm:$0xff]  ;;  %s2496_s4 = smov 16  }
 0x95e   :  { %v686_v57 = vmul.f32 0.044715, %v680_v56  ;;  %v684_v31 = vmul.f32 0.5, %v680_v56 }
 0x960   :  { %v688_v58 = vmul.f32 %v686_v57, %v680_v56 }
 0x962   :  { %v690_v59 = vmul.f32 %v688_v58, %v680_v56 }
 0x963   :  { %v681_v60 = vpop.f32.mrf.mxu2 }
 0x964   :  { %v692_v62 = vadd.f32 %v690_v59, %v680_v56  ;;  %v682_v63 = vadd.f32 %v1845_v54, %v681_v60  ;;  %v1840_v59 = vld [vmem:[%s2469_s5 + $0x1] ss:$0 sm:$0xff] }
 0x966   :  { %v687_v0 = vmul.f32 0.044715, %v682_v63  ;;  %v694_v2 = vmul.f32 0.7978846, %v692_v62  ;;  %v685_v9 = vmul.f32 0.5, %v682_v63 }
 0x968   :  { %v689_v3 = vmul.f32 %v687_v0, %v682_v63  ;;  %1881 = vtanh.f32 %v694_v2 }
 0x96a   :  { %v691_v4 = vmul.f32 %v689_v3, %v682_v63 }
 0x96c   :  { %v693_v27 = vadd.f32 %v691_v4, %v682_v63  ;;  %v1847_v4 = vld [vmem:[%s2470_s7 + $0x1] ss:$0 sm:$0xff] }
 0x96e   :  { %v695_v5 = vmul.f32 0.7978846, %v693_v27  ;;  %v1882_v6 = vpop.eup %1881 }
 0x96f   :  { %v698_v7 = vadd.f32 1.0, %v1882_v6 }
 0x970   :  { %1883 = vtanh.f32 %v695_v5 }
 0x971   :  { %v700_v11 = vmul.f32 %v698_v7, %v684_v31 }
 0x976   :  { %v1884_v8 = vpop.eup %1883 }
 0x977   :  { %v699_v10 = vadd.f32 1.0, %v1884_v8 }
 0x979   :  { %v701_v12 = vmul.f32 %v699_v10, %v685_v9 }
 0x97b   :  { %v702_v13 = vpack.c.bf16 %v701_v12, %v700_v11 }
 0x97d   :  { %779 = vmatmul.bf16.vlgmr.msra.gmra.mxu3 %v702_v13 }
 0xa00   :  { %v780_v16 = vpop.f32.mrf.mxu3 }
 0xa01   :  { %v781_v18 = vadd.f32 %v1846_v15, %v780_v16 }
 0xa03   :  { %v2243_v19 = vadd.f32 %v781_v18, %v2182_v61 }
 0xa05   :  { %v791_v20 = vsel %vm197_vm6, %v2243_v19, 0.0 }
 0xa06   :  { %792 = vadd.xlane.f32.xlu2 %v791_v20 }
 0xa08   :  { %v782_v21 = vpop.f32.mrf.mxu3 }
 0xa09   :  { %v783_v22 = vadd.f32 %v1846_v15, %v782_v21 }
 0xa0b   :  { %v2248_v23 = vadd.f32 %v783_v22, %v2187_v1 }
 0xa0d   :  { %v794_v24 = vsel %vm197_vm6, %v2248_v23, 0.0 }
 0xa0e   :  { %795 = vadd.xlane.f32.xlu0 %v794_v24 }
 0xa79   :  { %v793_v25 = vpop.xlane.xlu2 %792 }
 0xa7a   :  { %v797_v26 = vmul.f32 %v793_v25, %v2077_v39 }
 0xa7c   :  { %v799_v29 = vsub.f32 %v2243_v19, %v797_v26 }
 0xa7e   :  { %v801_v61 = vmul.f32 %v799_v29, %v799_v29 }
 0xa80   :  { %v803_v32 = vsel %vm197_vm6, %v801_v61, 0.0 }
 0xa81   :  { %v796_v33 = vpop.xlane.xlu0 %795  ;;  %804 = vadd.xlane.f32.xlu1 %v803_v32 }
 0xa82   :  { %v798_v34 = vmul.f32 %v796_v33, %v2077_v39 }
 0xa84   :  { %v800_v35 = vsub.f32 %v2248_v23, %v798_v34 }
 0xa86   :  { %v802_v1 = vmul.f32 %v800_v35, %v800_v35 }
 0xa88   :  { %v806_v36 = vsel %vm197_vm6, %v802_v1, 0.0 }
 0xa89   :  { %807 = vadd.xlane.f32.xlu2 %v806_v36 }
 0xaf4   :  { %v805_v38 = vpop.xlane.xlu1 %804 }
 0xaf5   :  { %v809_v30 = vmul.f32 %v805_v38, %v2077_v39 }
 0xaf7   :  { %v811_v42 = vadd.f32 1e-05, %v809_v30 }
 0xaf9   :  { %1885 = vrsqrt.f32 %v811_v42  ;;  %vm819_vm11 = vweird.f32 %v811_v42 }
 0xafc   :  { %v808_v43 = vpop.xlane.xlu2 %807 }
 0xafd   :  { %v810_v44 = vmul.f32 %v808_v43, %v2077_v39 }
 0xaff   :  { %v1886_v45 = vpop.eup %1885  ;;  %v812_v46 = vadd.f32 1e-05, %v810_v44 }
 0xb00   :  { %v814_v14 = vmul.f32 %v1886_v45, %v811_v42  ;;  %vm820_vm10 = vweird.f32 %v1886_v45 }
 0xb01   :  { %1887 = vrsqrt.f32 %v812_v46  ;;  %vm821_vm12 = vmor %vm819_vm11, %vm820_vm10  ;;  %vm829_vm2 = vweird.f32 %v812_v46 }
 0xb02   :  { %v815_v17 = vmul.f32 %v1886_v45, %v814_v14 }
 0xb04   :  { %v816_v47 = vmul.f32 0.5, %v815_v17 }
 0xb06   :  { %v817_v48 = vsub.f32 1.5, %v816_v47 }
 0xb07   :  { %v1888_v28 = vpop.eup %1887 }
 0xb08   :  { %v818_v49 = vmul.f32 %v1886_v45, %v817_v48  ;;  %v824_v50 = vmul.f32 %v1888_v28, %v812_v46  ;;  %vm830_vm13 = vweird.f32 %v1888_v28 }
 0xb09   :  { %vm831_vm3 = vmor %vm829_vm2, %vm830_vm13 }
 0xb0a   :  { %v825_v51 = vmul.f32 %v1888_v28, %v824_v50  ;;  %v822_v52 = vsel %vm821_vm12, %v1886_v45, %v818_v49 }
 0xb0b   :  { %v833_v56 = vmul.f32 %v822_v52, %v799_v29 }
 0xb0c   :  { %v826_v53 = vmul.f32 0.5, %v825_v51 }
 0xb0d   :  { %v838_v60 = vmul.f32 %v1839_v55, %v833_v56 }
 0xb0e   :  { %v827_v54 = vsub.f32 1.5, %v826_v53 }
 0xb0f   :  { %v843_v0 = vadd.f32 %v1840_v59, %v838_v60 }
 0xb10   :  { %v828_v57 = vmul.f32 %v1888_v28, %v827_v54 }
 0xb12   :  { %v832_v58 = vsel %vm831_vm3, %v1888_v28, %v828_v57 }
 0xb13   :  { %v834_v62 = vmul.f32 %v832_v58, %v800_v35 }
 0xb15   :  { %v839_v63 = vmul.f32 %v1839_v55, %v834_v62 }
 0xb17   :  { %v844_v2 = vadd.f32 %v1840_v59, %v839_v63 }
 0xb19   :  { %v845_v3 = vpack.c.bf16 %v844_v2, %v843_v0 }
 0xb1b   :  { %1659 = vmatmul.msk.bf16.vlgmr.msra.gmra.mxu1 %vm197_vm6, %v845_v3 }
 0xb98   :  { %v880_v27 = vpop.f32.mrf.mxu1 }
 0xb99   :  { %v881_v5 = vadd.f32 %v1847_v4, %v880_v27 }
 0xb9b   :  { %v885_v6 = vpack.c.bf16 %v881_v5, %v881_v5 }
 0xb9d   :  { %v888_v7 = vunpack.c.l.b16 %v885_v6 }
 0xb9f   :  { %v2276_v8 = vpack.c.b16 %v888_v7, %v888_v7 }
 0xba0   :  { %v882_v31 = vpop.f32.mrf.mxu1 }
 0xba1   :  { %v883_v9 = vadd.f32 %v1847_v4, %v882_v31  ;;  %1007 = vrot.lane.b32.xlu2 %v2276_v8, %s1923_s24  ;;  %890 = vrot.lane.b32.xlu1 %v2276_v8, %s1922_s23 }
 0xba3   :  { %v886_v10 = vpack.c.bf16 %v883_v9, %v883_v9 }
 0xba5   :  { %v912_v11 = vunpack.c.l.b16 %v886_v10 }
 0xba7   :  { %v2282_v12 = vpack.c.b16 %v912_v11, %v912_v11 }
 0xba9   :  { %914 = vrot.lane.b32.xlu0 %v2282_v12, %s1922_s23  ;;  %1005 = vrot.lane.b32.xlu1 %v2276_v8, %s1924_s25 }
 0xbb1   :  { %1030 = vrot.lane.b32.xlu0 %v2282_v12, %s1923_s24 }
 0xbb9   :  { %1028 = vrot.lane.b32.xlu0 %v2282_v12, %s1924_s25 }
 0xbfb   :  { %v1008_v16 = vpop.permute.xlu2 %1007 }
 0xbfc   :  { %v1013_v21 = vsel %vm112_vm5, %v1008_v16, 0 }
 0xc13   :  { %v891_v13 = vpop.permute.xlu1 %890 }
 0xc14   :  { %v896_v15 = vsel %vm112_vm5, %v891_v13, 0 }
 0xc15   :  { %905 = vmatpush.bf16.xpose.msra.mxu0 %v896_v15 }
 0xc1b   :  { %v915_v18 = vpop.permute.xlu0 %914  ;;  %v1006_v26 = vpop.permute.xlu1 %1005 }
 0xc1c   :  { %v920_v20 = vsel %vm112_vm5, %v915_v18, 0  ;;  %1660 = vmatmul.msk.bf16.vlgmr.msra.gmra.mxu0 %vm112_vm5, %v885_v6 }
 0xc1d   :  { %929 = vmatpush.bf16.xpose.msrb.mxu2 %v920_v20 }
 0xc23   :  { %v1031_v22 = vpop.permute.xlu0 %1030 }
 0xc24   :  { %v1036_v24 = vsel %vm112_vm5, %v1031_v22, 0  ;;  %1661 = vmatmul.msk.bf16.vlgmr.msrb.gmra.mxu2 %vm112_vm5, %v886_v10 }
 0xc25   :  { %1022 = vmatpush.bf16.xpose.msra.mxu2 %v1013_v21  ;;  %1045 = vmatpush.bf16.xpose.msrb.mxu3 %v1036_v24 }
 0xc2b   :  { %v1029_v25 = vpop.permute.xlu0 %1028 }
 0xc2c   :  { %1665 = vmatmul.msk.bf16.vlgmr.msrb.gmra.mxu3 %vm112_vm5, %v1029_v25 }
 0xc34   :  { %1664 = vmatmul.msk.bf16.vlgmr.msra.gmra.mxu2 %vm112_vm5, %v1006_v26 }
 0xc99   :  { %v907_v29 = vpop.f32.mrf.mxu0 }
 0xc9a   :  { %v935_v61 = vsel %vm2122_vm15, %v907_v29, -1e+30 }
 0xc9b   :  { %v937_v32 = vsel %vm351_vm0, %v935_v61, -inf }
 0xc9c   :  { %938 = vmax.xlane.f32.xlu2 %v937_v32 }
 0xca1   :  { %v909_v33 = vpop.f32.mrf.mxu0 }
 0xca7   :  { %v931_v34 = vpop.f32.mrf.mxu2 }
 0xca8   :  { %v936_v35 = vsel %vm2122_vm15, %v931_v34, -1e+30 }
 0xca9   :  { %v940_v1 = vsel %vm351_vm0, %v936_v35, -inf }
 0xcaa   :  { %941 = vmax.xlane.f32.xlu1 %v940_v1 }
 0xcaf   :  { %v933_v36 = vpop.f32.mrf.mxu2  ;;  %v1047_v37 = vpop.f32.mrf.mxu3 }
 0xcb0   :  { %v1052_v38 = vsel %vm2122_vm15, %v1047_v37, -1e+30  ;;  %v1806_v37 = vld [vmem:[%s2473_s8 + $0x18] sm:$0xff] }
 0xcb1   :  { %v1056_v30 = vsel %vm351_vm0, %v1052_v38, -inf  ;;  %1158 = vmatpush.bf16.msrb.mxu2 %v1806_v37  ;;  %v1809_v37 = vld [vmem:[%s2479_s14 + $0x40] sm:$0xff] }
 0xcb2   :  { %1057 = vmax.xlane.f32.xlu2 %v1056_v30 }
 0xcb7   :  { %v1024_v41 = vpop.f32.mrf.mxu2  ;;  %v1049_v42 = vpop.f32.mrf.mxu3 }
 0xcb8   :  { %v1051_v43 = vsel %vm2122_vm15, %v1024_v41, -1e+30 }
 0xcb9   :  { %v1053_v44 = vsel %vm351_vm0, %v1051_v43, -inf }
 0xcba   :  { %1054 = vmax.xlane.f32.xlu0 %v1053_v44  ;;  %v1848_v44 = vld [vmem:[%s2472_s9 + $0x1] ss:$0 sm:$0xff] }
 0xcbf   :  { %v1026_v45 = vpop.f32.mrf.mxu2 }
 0xcca   :  { %961 = vrot.lane.b32.xlu2 %v2276_v8, %s1921_s2 }
 0xcd2   :  { %1098 = vrot.lane.b32.xlu2 %v2282_v12, %s1925_s26 }
 0xd0f   :  { %v939_v46 = vpop.xlane.xlu2 %938 }
 0xd10   :  { %v943_v14 = vsub.f32 %v935_v61, %v939_v46 }
 0xd12   :  { %v945_v17 = vmul.f32 1.442695, %v943_v14 }
 0xd14   :  { %1889 = vpow2.f32 %v945_v17 }
 0xd1a   :  { %v1890_v47 = vpop.eup %1889 }
 0xd1b   :  { %v949_v48 = vsel %vm351_vm0, %v1890_v47, 0.0 }
 0xd1c   :  { %950 = vadd.xlane.f32.xlu1 %v949_v48 }
 0xd1d   :  { %v942_v40 = vpop.xlane.xlu1 %941 }
 0xd1e   :  { %v944_v28 = vsub.f32 %v936_v35, %v942_v40 }
 0xd20   :  { %v947_v49 = vmul.f32 1.442695, %v944_v28 }
 0xd22   :  { %1891 = vpow2.f32 %v947_v49 }
 0xd25   :  { %v1058_v50 = vpop.xlane.xlu2 %1057 }
 0xd26   :  { %v1060_v51 = vsub.f32 %v1052_v38, %v1058_v50  ;;  %v1805_v38 = vld [vmem:[%s2473_s8 + $0x10] sm:$0xff] }
 0xd27   :  { %1159 = vmatpush.bf16.msrb.mxu2 %v1805_v38  ;;  %v1851_v38 = vld [vmem:[%s2476_s13 + $0x1] ss:$0 sm:$0xff] }
 0xd28   :  { %v1892_v52 = vpop.eup %1891  ;;  %v1063_v53 = vmul.f32 1.442695, %v1060_v51 }
 0xd29   :  { %v952_v54 = vsel %vm351_vm0, %v1892_v52, 0.0 }
 0xd2a   :  { %1893 = vpow2.f32 %v1063_v53  ;;  %953 = vadd.xlane.f32.xlu0 %v952_v54 }
 0xd2d   :  { %v962_v55 = vpop.permute.xlu2 %961  ;;  %v1055_v56 = vpop.xlane.xlu0 %1054 }
 0xd2e   :  { %v967_v57 = vsel %vm381_vm14, %v962_v55, 0  ;;  %v1059_v58 = vsub.f32 %v1051_v43, %v1055_v56 }
 0xd2f   :  { %976 = vmatpush.bf16.msrb.mxu1 %v967_v57  ;;  %v1808_v57 = vld [vmem:[%s2477_s12 + $0x18] sm:$0xff] }
 0xd30   :  { %v1894_v59 = vpop.eup %1893  ;;  %v1061_v60 = vmul.f32 1.442695, %v1059_v58  ;;  %1265 = vmatpush.bf16.msra.mxu3 %v1808_v57 }
 0xd31   :  { %v1068_v62 = vsel %vm351_vm0, %v1894_v59, 0.0 }
 0xd32   :  { %1895 = vpow2.f32 %v1061_v60  ;;  %1069 = vadd.xlane.f32.xlu0 %v1068_v62  ;;  %v1807_v60 = vld [vmem:[%s2477_s12 + $0x10] sm:$0xff] }
 0xd34   :  { %1266 = vmatpush.bf16.msra.mxu3 %v1807_v60 }
 0xd35   :  { %982 = vrot.lane.b32.xlu1 %v2282_v12, %s1921_s2  ;;  %v1099_v7 = vpop.permute.xlu2 %1098 }
 0xd36   :  { %v1104_v11 = vsel %vm381_vm14, %v1099_v7, 0 }
 0xd38   :  { %v1896_v63 = vpop.eup %1895 }
 0xd39   :  { %v1065_v0 = vsel %vm351_vm0, %v1896_v63, 0.0 }
 0xd3a   :  { %1066 = vadd.xlane.f32.xlu0 %v1065_v0 }
 0xd4e   :  { %1077 = vrot.lane.b32.xlu0 %v2276_v8, %s1925_s26 }
 0xd8f   :  { %v951_v2 = vpop.xlane.xlu1 %950 }
 0xd90   :  { %1897 = vrcp.f32 %v951_v2 }
 0xd96   :  { %v1898_v3 = vpop.eup %1897 }
 0xd97   :  { %v957_v4 = vmul.f32 %v1898_v3, %v1890_v47 }
 0xd99   :  { %v959_v27 = vpack.c.bf16 %v957_v4, %v957_v4 }
 0xd9b   :  { %1662 = vmatmul.msk.bf16.vlgmr.msrb.gmra.mxu1 %vm351_vm0, %v959_v27 }
 0xd9d   :  { %v954_v5 = vpop.xlane.xlu0 %953 }
 0xd9e   :  { %1899 = vrcp.f32 %v954_v5 }
 0xda4   :  { %v1900_v6 = vpop.eup %1899 }
 0xda5   :  { %v958_v31 = vmul.f32 %v1900_v6, %v1892_v52  ;;  %v1070_v12 = vpop.xlane.xlu0 %1069 }
 0xda6   :  { %1901 = vrcp.f32 %v1070_v12 }
 0xda7   :  { %v983_v9 = vpop.permute.xlu1 %982  ;;  %v960_v8 = vpack.c.bf16 %v958_v31, %v958_v31 }
 0xda8   :  { %v988_v10 = vsel %vm381_vm14, %v983_v9, 0 }
 0xda9   :  { %997 = vmatpush.bf16.msrb.mxu0 %v988_v10 }
 0xdac   :  { %1663 = vmatmul.msk.bf16.vlgmr.msrb.gmra.mxu0 %vm351_vm0, %v960_v8  ;;  %v1902_v13 = vpop.eup %1901 }
 0xdad   :  { %1113 = vmatpush.bf16.msra.mxu0 %v1104_v11  ;;  %v1067_v15 = vpop.xlane.xlu0 %1066  ;;  %v1074_v16 = vmul.f32 %v1902_v13, %v1894_v59  ;;  %v1849_v13 = vld [vmem:[%s2474_s10 + $0x1] ss:$0 sm:$0xff] }
 0xdae   :  { %1903 = vrcp.f32 %v1067_v15 }
 0xdaf   :  { %v1076_v18 = vpack.c.bf16 %v1074_v16, %v1074_v16 }
 0xdb4   :  { %v1904_v20 = vpop.eup %1903 }
 0xdb5   :  { %v1073_v21 = vmul.f32 %v1904_v20, %v1896_v63  ;;  %v1850_v20 = vld [vmem:[%s2475_s11 + $0x1] ss:$0 sm:$0xff] }
 0xdb7   :  { %v1075_v25 = vpack.c.bf16 %v1073_v21, %v1073_v21 }
 0xdbc   :  { %1667 = vmatmul.msk.bf16.vlgmr.msra.gmra.mxu0 %vm351_vm0, %v1076_v18 }
 0xdc0   :  { %v1078_v22 = vpop.permute.xlu0 %1077 }
 0xdc1   :  { %v1083_v24 = vsel %vm381_vm14, %v1078_v22, 0 }
 0xdc2   :  { %1092 = vmatpush.bf16.msra.mxu1 %v1083_v24 }
 0xdc5   :  { %1666 = vmatmul.msk.bf16.vlgmr.msra.gmra.mxu1 %vm351_vm0, %v1075_v25 }
 0xe18   :  { %v978_v26 = vpop.f32.mrf.mxu1 }
 0xe19   :  { %1003 = vst.msk [vmem:[#allocation2] sm:$0xff] %vm112_vm5, %v978_v26 }
 0xe20   :  { %v980_v29 = vpop.f32.mrf.mxu1 }
 0xe29   :  { %v999_v61 = vpop.f32.mrf.mxu0 }
 0xe2a   :  { %1004 = vst.msk [vmem:[#allocation2 + $0x8] sm:$0xff] %vm112_vm5, %v999_v61  ;;  %v1816_v61 = vld [vmem:[%s2479_s14 + $0x78] sm:$0xff] }
 0xe2b   :  { %1362 = vmatpush.bf16.msrb.mxu1 %v1816_v61  ;;  %v1818_v61 = vld [vmem:[%s2493_s21 + $0x8] sm:$0xff] }
 0xe31   :  { %v1001_v32 = vpop.f32.mrf.mxu0 }
 0xe32   :  { %v1815_v32 = vld [vmem:[%s2479_s14 + $0x70] sm:$0xff] }
 0xe33   :  { %1363 = vmatpush.bf16.msrb.mxu1 %v1815_v32  ;;  %v1498_v32 = vsel %vm197_vm6, %v1818_v61, 0 }
 0xe39   :  { %v1115_v33 = vpop.f32.mrf.mxu0 }
 0xe3a   :  { %1123 = vrot.lane.b32.xlu2 %v1115_v33, %s2496_s4  ;;  %v1814_v33 = vld [vmem:[%s2479_s14 + $0x68] sm:$0xff] }
 0xe3b   :  { %1364 = vmatpush.bf16.msrb.mxu1 %v1814_v33  ;;  %v1817_v33 = vld [vmem:[%s2493_s21] sm:$0xff] }
 0xe41   :  { %v1117_v34 = vpop.f32.mrf.mxu0 }
 0xe42   :  { %v1094_v35 = vpop.f32.mrf.mxu1  ;;  %v1813_v34 = vld [vmem:[%s2479_s14 + $0x60] sm:$0xff] }
 0xe43   :  { %1121 = vrot.lane.b32.xlu1 %v1094_v35, %s2496_s4  ;;  %1365 = vmatpush.bf16.msrb.mxu1 %v1813_v34  ;;  %v1812_v35 = vld [vmem:[%s2479_s14 + $0x58] sm:$0xff]  ;;  %v1495_v34 = vsel %vm197_vm6, %v1817_v33, 0 }
 0xe47   :  { %1366 = vmatpush.bf16.msrb.mxu1 %v1812_v35 }
 0xe4a   :  { %v1096_v1 = vpop.f32.mrf.mxu1 }
 0xe4b   :  { %v1811_v1 = vld [vmem:[%s2479_s14 + $0x50] sm:$0xff] }
 0xe4c   :  { %1367 = vmatpush.bf16.msrb.mxu1 %v1811_v1 }
 0xe94   :  { %v1124_v36 = vpop.permute.xlu2 %1123 }
 0xe95   :  { %1128 = vst.msk [vmem:[#allocation2 + $0x8] sm:$0xff] %vm543_vm1, %v1124_v36  ;;  %v1810_v36 = vld [vmem:[%s2479_s14 + $0x48] sm:$0xff] }
 0xe96   :  { %1368 = vmatpush.bf16.msrb.mxu1 %v1810_v36 }
 0xe9a   :  { %1369 = vmatpush.bf16.msrb.mxu1 %v1809_v37 }
 0xe9c   :  { %v1130_v42 = vld [vmem:[#allocation2 + $0x8] sm:$0xff] }
 0xeb5   :  { %v1122_v30 = vpop.permute.xlu1 %1121 }
 0xeb6   :  { %1127 = vst.msk [vmem:[#allocation2] sm:$0xff] %vm543_vm1, %v1122_v30 }
 0xebd   :  { %v1129_v41 = vld [vmem:[#allocation2] sm:$0xff] }
 0xebe   :  { %v1131_v43 = vpack.c.bf16 %v1130_v42, %v1129_v41 }
 0xec0   :  { %1680 = vmatmul.msk.bf16.vlgmr.msrb.gmra.mxu2 %vm197_vm6, %v1131_v43 }
 0xf43   :  { %v1161_v45 = vpop.f32.mrf.mxu2 }
 0xf44   :  { %v1166_v46 = vadd.f32 %v1161_v45, %v2243_v19 }
 0xf46   :  { %v2349_v14 = vadd.f32 %v1848_v44, %v1166_v46 }
 0xf48   :  { %v1179_v17 = vsel %vm197_vm6, %v2349_v14, 0.0 }
 0xf49   :  { %1180 = vadd.xlane.f32.xlu1 %v1179_v17 }
 0xf4b   :  { %v1163_v47 = vpop.f32.mrf.mxu2 }
 0xf4c   :  { %v1167_v48 = vadd.f32 %v1163_v47, %v2248_v23 }
 0xf4e   :  { %v2354_v40 = vadd.f32 %v1848_v44, %v1167_v48 }
 0xf50   :  { %v1182_v28 = vsel %vm197_vm6, %v2354_v40, 0.0 }
 0xf51   :  { %1183 = vadd.xlane.f32.xlu2 %v1182_v28 }
 0xfbc   :  { %v1181_v49 = vpop.xlane.xlu1 %1180 }
 0xfbd   :  { %v1185_v50 = vmul.f32 %v1181_v49, %v2077_v39 }
 0xfbf   :  { %v1187_v19 = vsub.f32 %v2349_v14, %v1185_v50 }
 0xfc1   :  { %v1189_v51 = vmul.f32 %v1187_v19, %v1187_v19 }
 0xfc3   :  { %v1191_v52 = vsel %vm197_vm6, %v1189_v51, 0.0 }
 0xfc4   :  { %1192 = vadd.xlane.f32.xlu0 %v1191_v52  ;;  %v1184_v53 = vpop.xlane.xlu2 %1183 }
 0xfc5   :  { %v1186_v54 = vmul.f32 %v1184_v53, %v2077_v39 }
 0xfc7   :  { %v1188_v23 = vsub.f32 %v2354_v40, %v1186_v54 }
 0xfc9   :  { %v1190_v55 = vmul.f32 %v1188_v23, %v1188_v23 }
 0xfcb   :  { %v1194_v56 = vsel %vm197_vm6, %v1190_v55, 0.0 }
 0xfcc   :  { %1195 = vadd.xlane.f32.xlu2 %v1194_v56 }
0x1037   :  { %v1193_v58 = vpop.xlane.xlu0 %1192 }
0x1038   :  { %v1197_v59 = vmul.f32 %v1193_v58, %v2077_v39 }
0x103a   :  { %v1199_v62 = vadd.f32 1e-05, %v1197_v59  ;;  %v1852_v59 = vld [vmem:[%s2478_s15 + $0x1] ss:$0 sm:$0xff] }
0x103c   :  { %1905 = vrsqrt.f32 %v1199_v62  ;;  %vm1207_vm14 = vweird.f32 %v1199_v62 }
0x103f   :  { %v1196_v63 = vpop.xlane.xlu2 %1195 }
0x1040   :  { %v1198_v0 = vmul.f32 %v1196_v63, %v2077_v39 }
0x1042   :  { %v1906_v2 = vpop.eup %1905  ;;  %v1200_v3 = vadd.f32 1e-05, %v1198_v0 }
0x1043   :  { %v1202_v4 = vmul.f32 %v1906_v2, %v1199_v62  ;;  %vm1208_vm5 = vweird.f32 %v1906_v2 }
0x1044   :  { %1907 = vrsqrt.f32 %v1200_v3  ;;  %vm1209_vm15 = vmor %vm1207_vm14, %vm1208_vm5  ;;  %vm1217_vm1 = vweird.f32 %v1200_v3 }
0x1045   :  { %v1203_v27 = vmul.f32 %v1906_v2, %v1202_v4 }
0x1047   :  { %v1204_v5 = vmul.f32 0.5, %v1203_v27 }
0x1049   :  { %v1205_v6 = vsub.f32 1.5, %v1204_v5  ;;  %v1824_v5 = vld [vmem:[%s2493_s21 + $0x38] sm:$0xff] }
0x104a   :  { %v1908_v7 = vpop.eup %1907 }
0x104b   :  { %v1206_v31 = vmul.f32 %v1906_v2, %v1205_v6  ;;  %v1212_v9 = vmul.f32 %v1908_v7, %v1200_v3  ;;  %vm1218_vm0 = vweird.f32 %v1908_v7  ;;  %v1516_v6 = vsel %vm197_vm6, %v1824_v5, 0 }
0x104c   :  { %vm1219_vm4 = vmor %vm1217_vm1, %vm1218_vm0  ;;  %1518 = vmatpush.bf16.xpose.msrb.mxu0 %v1516_v6 }
0x104d   :  { %v1213_v10 = vmul.f32 %v1908_v7, %v1212_v9  ;;  %v1210_v11 = vsel %vm1209_vm15, %v1906_v2, %v1206_v31 }
0x104e   :  { %v1221_v15 = vmul.f32 %v1210_v11, %v1187_v19 }
0x104f   :  { %v1214_v12 = vmul.f32 0.5, %v1213_v10 }
0x1050   :  { %v1226_v21 = vmul.f32 %v1849_v13, %v1221_v15 }
0x1051   :  { %v1215_v8 = vsub.f32 1.5, %v1214_v12  ;;  %v1821_v12 = vld [vmem:[%s2493_s21 + $0x20] sm:$0xff] }
0x1052   :  { %v1231_v25 = vadd.f32 %v1850_v20, %v1226_v21 }
0x1053   :  { %v1216_v16 = vmul.f32 %v1908_v7, %v1215_v8 }
0x1055   :  { %v1220_v18 = vsel %vm1219_vm4, %v1908_v7, %v1216_v16  ;;  %v1507_v16 = vsel %vm197_vm6, %v1821_v12, 0 }
0x1056   :  { %v1222_v22 = vmul.f32 %v1220_v18, %v1188_v23 }
0x1058   :  { %v1227_v24 = vmul.f32 %v1849_v13, %v1222_v22 }
0x105a   :  { %v1232_v26 = vadd.f32 %v1850_v20, %v1227_v24  ;;  %v1820_v24 = vld [vmem:[%s2493_s21 + $0x18] sm:$0xff] }
0x105c   :  { %v1233_v29 = vpack.c.bf16 %v1232_v26, %v1231_v25  ;;  %v1504_v25 = vsel %vm197_vm6, %v1820_v24, 0  ;;  %v1819_v26 = vld [vmem:[%s2493_s21 + $0x10] sm:$0xff] }
0x105e   :  { %1697 = vmatmul.msk.bf16.vlgmr.msra.gmra.mxu3 %vm197_vm6, %v1233_v29  ;;  %v1501_v29 = vsel %vm197_vm6, %v1819_v26, 0 }
0x10e1   :  { %v1268_v30 = vpop.f32.mrf.mxu3 }
0x10e2   :  { %v1269_v41 = vadd.f32 %v1851_v38, %v1268_v30 }
0x10e4   :  { %v1275_v42 = vmul.f32 0.044715, %v1269_v41  ;;  %v1273_v54 = vmul.f32 0.5, %v1269_v41 }
0x10e6   :  { %v1277_v43 = vmul.f32 %v1275_v42, %v1269_v41 }
0x10e8   :  { %v1279_v44 = vmul.f32 %v1277_v43, %v1269_v41 }
0x10e9   :  { %v1270_v45 = vpop.f32.mrf.mxu3 }
0x10ea   :  { %v1281_v46 = vadd.f32 %v1279_v44, %v1269_v41  ;;  %v1271_v17 = vadd.f32 %v1851_v38, %v1270_v45 }
0x10ec   :  { %v1276_v47 = vmul.f32 0.044715, %v1271_v17  ;;  %v1283_v48 = vmul.f32 0.7978846, %v1281_v46  ;;  %v1274_v23 = vmul.f32 0.5, %v1271_v17 }
0x10ee   :  { %v1278_v28 = vmul.f32 %v1276_v47, %v1271_v17  ;;  %1909 = vtanh.f32 %v1283_v48 }
0x10f0   :  { %v1280_v49 = vmul.f32 %v1278_v28, %v1271_v17 }
0x10f2   :  { %v1282_v50 = vadd.f32 %v1280_v49, %v1271_v17 }
0x10f4   :  { %v1284_v19 = vmul.f32 0.7978846, %v1282_v50  ;;  %v1910_v51 = vpop.eup %1909 }
0x10f5   :  { %v1287_v52 = vadd.f32 1.0, %v1910_v51 }
0x10f6   :  { %1911 = vtanh.f32 %v1284_v19 }
0x10f7   :  { %v1289_v56 = vmul.f32 %v1287_v52, %v1273_v54 }
0x10fc   :  { %v1912_v53 = vpop.eup %1911 }
0x10fd   :  { %v1288_v55 = vadd.f32 1.0, %v1912_v53  ;;  %v1854_v53 = vld [vmem:[%s2481_s17] ss:$0 sm:$0xff] }
0x10ff   :  { %v1290_v57 = vmul.f32 %v1288_v55, %v1274_v23 }
0x1101   :  { %v1291_v58 = vpack.c.bf16 %v1290_v57, %v1289_v56 }
0x1103   :  { %1370 = vmatmul.bf16.vlgmr.msrb.gmra.mxu1 %v1291_v58 }
0x1180   :  { %v1371_v60 = vpop.f32.mrf.mxu1 }
0x1181   :  { %v1372_v62 = vadd.f32 %v1852_v59, %v1371_v60 }
0x1183   :  { %v1376_v63 = vadd.f32 %v1372_v62, %v2349_v14  ;;  %v1823_v14 = vld [vmem:[%s2493_s21 + $0x30] sm:$0xff] }
0x1184   :  { %v1513_v7 = vsel %vm197_vm6, %v1823_v14, 0 }
0x1185   :  { %v1380_v0 = vsel %vm197_vm6, %v1376_v63, 0.0  ;;  %1519 = vmatpush.bf16.xpose.msrb.mxu0 %v1513_v7 }
0x1186   :  { %1381 = vadd.xlane.f32.xlu1 %v1380_v0 }
0x1188   :  { %v1373_v2 = vpop.f32.mrf.mxu1 }
0x1189   :  { %v1374_v3 = vadd.f32 %v1852_v59, %v1373_v2 }
0x118b   :  { %v1377_v4 = vadd.f32 %v1374_v3, %v2354_v40  ;;  %v1822_v40 = vld [vmem:[%s2493_s21 + $0x28] sm:$0xff] }
0x118c   :  { %v1510_v9 = vsel %vm197_vm6, %v1822_v40, 0 }
0x118d   :  { %v1383_v27 = vsel %vm197_vm6, %v1377_v4, 0.0  ;;  %1520 = vmatpush.bf16.xpose.msrb.mxu0 %v1510_v9 }
0x118e   :  { %1384 = vadd.xlane.f32.xlu0 %v1383_v27 }
0x1195   :  { %1521 = vmatpush.bf16.xpose.msrb.mxu0 %v1507_v16 }
0x119d   :  { %1522 = vmatpush.bf16.xpose.msrb.mxu0 %v1504_v25 }
0x11a5   :  { %1523 = vmatpush.bf16.xpose.msrb.mxu0 %v1501_v29 }
0x11ad   :  { %1524 = vmatpush.bf16.xpose.msrb.mxu0 %v1498_v32 }
0x11b5   :  { %1525 = vmatpush.bf16.xpose.msrb.mxu0 %v1495_v34 }
0x11f9   :  { %v1382_v31 = vpop.xlane.xlu1 %1381 }
0x11fa   :  { %v1386_v10 = vmul.f32 %v1382_v31, %v2077_v39 }
0x11fc   :  { %v1388_v11 = vsub.f32 %v1376_v63, %v1386_v10 }
0x11fe   :  { %v1390_v8 = vmul.f32 %v1388_v11, %v1388_v11 }
0x1200   :  { %v1392_v13 = vsel %vm197_vm6, %v1390_v8, 0.0 }
0x1201   :  { %v1385_v15 = vpop.xlane.xlu0 %1384  ;;  %1393 = vadd.xlane.f32.xlu2 %v1392_v13 }
0x1202   :  { %v1387_v18 = vmul.f32 %v1385_v15, %v2077_v39 }
0x1204   :  { %v1389_v20 = vsub.f32 %v1377_v4, %v1387_v18 }
0x1206   :  { %v1391_v21 = vmul.f32 %v1389_v20, %v1389_v20 }
0x1208   :  { %v1395_v22 = vsel %vm197_vm6, %v1391_v21, 0.0 }
0x1209   :  { %1396 = vadd.xlane.f32.xlu1 %v1395_v22 }
0x1274   :  { %v1394_v35 = vpop.xlane.xlu2 %1393 }
0x1275   :  { %v1398_v1 = vmul.f32 %v1394_v35, %v2077_v39 }
0x1277   :  { %v1400_v36 = vadd.f32 1e-05, %v1398_v1 }
0x1279   :  { %1913 = vrsqrt.f32 %v1400_v36  ;;  %vm1408_vm8 = vweird.f32 %v1400_v36 }
0x127c   :  { %v1397_v37 = vpop.xlane.xlu1 %1396 }
0x127d   :  { %v1399_v38 = vmul.f32 %v1397_v37, %v2077_v39  ;;  %v1853_v39 = vld [vmem:[%s2480_s16] ss:$0 sm:$0xff] }
0x127f   :  { %v1914_v30 = vpop.eup %1913  ;;  %v1401_v41 = vadd.f32 1e-05, %v1399_v38 }
0x1280   :  { %v1403_v42 = vmul.f32 %v1914_v30, %v1400_v36  ;;  %vm1409_vm7 = vweird.f32 %v1914_v30 }
0x1281   :  { %1915 = vrsqrt.f32 %v1401_v41  ;;  %vm1410_vm9 = vmor %vm1408_vm8, %vm1409_vm7  ;;  %vm1418_vm11 = vweird.f32 %v1401_v41 }
0x1282   :  { %v1404_v43 = vmul.f32 %v1914_v30, %v1403_v42 }
0x1284   :  { %v1405_v44 = vmul.f32 0.5, %v1404_v43 }
0x1286   :  { %v1406_v45 = vsub.f32 1.5, %v1405_v44 }
0x1287   :  { %v1916_v46 = vpop.eup %1915 }
0x1288   :  { %v1407_v17 = vmul.f32 %v1914_v30, %v1406_v45  ;;  %v1413_v47 = vmul.f32 %v1916_v46, %v1401_v41  ;;  %vm1419_vm10 = vweird.f32 %v1916_v46 }
0x1289   :  { %vm1420_vm12 = vmor %vm1418_vm11, %vm1419_vm10 }
0x128a   :  { %v1414_v48 = vmul.f32 %v1916_v46, %v1413_v47  ;;  %v1411_v28 = vsel %vm1410_vm9, %v1914_v30, %v1407_v17 }
0x128b   :  { %v1422_v19 = vmul.f32 %v1411_v28, %v1388_v11 }
0x128c   :  { %v1415_v49 = vmul.f32 0.5, %v1414_v48 }
0x128d   :  { %v1427_v54 = vmul.f32 %v1853_v39, %v1422_v19 }
0x128e   :  { %v1416_v50 = vsub.f32 1.5, %v1415_v49 }
0x128f   :  { %v1432_v56 = vadd.f32 %v1854_v53, %v1427_v54 }
0x1290   :  { %v1417_v51 = vmul.f32 %v1916_v46, %v1416_v50 }
0x1292   :  { %v1421_v52 = vsel %vm1420_vm12, %v1916_v46, %v1417_v51 }
0x1293   :  { %v1423_v23 = vmul.f32 %v1421_v52, %v1389_v20 }
0x1295   :  { %v1428_v55 = vmul.f32 %v1853_v39, %v1423_v23 }
0x1297   :  { %v1433_v57 = vadd.f32 %v1854_v53, %v1428_v55 }
0x1299   :  { %v1434_v58 = vpack.c.bf16 %v1433_v57, %v1432_v56 }
0x129b   :  { %1779 = vmatmul.msk.bf16.vlgmr.msrb.gmra.mxu0 %vm197_vm6, %v1434_v58 }
0x1318   :  { %v1527_v59 = vpop.f32.mrf.mxu0 }
0x1319   :  { %1532 = vst [vmem:[%s2482_s18] sm:$0xff] %v1527_v59 }
0x1320   :  { %v1529_v60 = vpop.f32.mrf.mxu0 }
0x1321   :  { %1533 = vst [vmem:[%s2482_s18 + $0x8] sm:$0xff] %v1529_v60 }

</bundles_post_ra>
